<compile_context>
chip_gen: v7x
topology: tpu7x:2x2x1
jax: 0.10.0
libtpu: 0.0.40
codegen_flags: <defaults>
</compile_context>

<pallas_src>
import functools

import jax
import jax.numpy as jnp
from jax.experimental import pallas as pl
from jax.experimental.pallas import tpu as pltpu


# ----------------------------- post activations -----------------------------
def _relu(y):
    return jnp.maximum(y, 0.0)


def _relu6(y):
    return jnp.clip(y, 0.0, 6.0)


def _hswish(y):
    return y * jnp.clip(y + 3.0, 0.0, 6.0) * (1.0 / 6.0)


_ACTS = {None: None, "relu": _relu, "relu6": _relu6, "hswish": _hswish}
_ACT_FLOPS = {None: 1, "relu": 2, "relu6": 3, "hswish": 6}

_TARGET_BLOCK_BYTES = 2 * 1024 * 1024   # safe on v5e (16 MiB scoped default):
                                        # 3 bufs x 2 (double-buffer) = 12 MiB.
_SMALL_FAST_PATH_BYTES = 1 << 20        # below this, pallas_call fixed cost
                                        # dominates -> let XLA fuse it.


# --------------------------------- kernel -----------------------------------
def _make_residual_kernel(post_act, dtype):
    act = _ACTS[post_act]
    dtype = jnp.dtype(dtype)
    is_int = jnp.issubdtype(dtype, jnp.integer)

    def kernel(a_ref, b_ref, o_ref):
        a = a_ref[...]
        b = b_ref[...]
        if is_int:
            # Integer residuals: accumulate in f32 and saturate (no wrap).
            y = a.astype(jnp.float32) + b.astype(jnp.float32)
            if act is not None:
                y = act(y)
            info = jnp.iinfo(dtype)
            y = jnp.clip(jnp.round(y), info.min, info.max)
        else:
            # Native-dtype arithmetic: f32 stays f32; bf16 runs natively on the
            # v6e/v7x VPU (Mosaic handles bf16 lowering on v5e) -> no cast ops.
            y = a + b
            if act is not None:
                y = act(y)
        o_ref[...] = y.astype(o_ref.dtype)

    return kernel


# ------------------------------ layout helpers -------------------------------
def _sublane_for(itemsize: int) -> int:
    # f32 vreg packs (8,128); bf16 packs (16,128); int8/fp8 pack (32,128).
    if itemsize == 2:
        return 16
    if itemsize == 1:
        return 32
    return 8


def _pick_lane_width(n: int):
    # Widest lane-dense last dim (multiple of 128, up to 8192) that divides n
    # exactly; rows need not be sublane-aligned -- the trailing partial block
    # is masked by Pallas while the BlockSpec tile stays sublane-aligned.
    for k in (64, 32, 16, 8, 4, 2, 1):
        lane_w = 128 * k
        if n % lane_w == 0:
            return lane_w
    return None


def _round_up(a: int, b: int) -> int:
    return (a + b - 1) // b * b


def _xla_residual(a, b, post_act):
    """Single XLA-fused elementwise pass (small / ragged tensors)."""
    act = _ACTS[post_act]
    dtype = a.dtype
    if jnp.issubdtype(dtype, jnp.integer):
        y = a.astype(jnp.float32) + b.astype(jnp.float32)
        if act is not None:
            y = act(y)
        info = jnp.iinfo(dtype)
        y = jnp.clip(jnp.round(y), info.min, info.max)
    else:
        y = a + b
        if act is not None:
            y = act(y)
    return y.astype(dtype)


# ------------------------- cached pallas_call builder ------------------------
@functools.lru_cache(maxsize=None)
def _build_residual_call(rows, lane_w, tile_rows, dtype_name, post_act):
    dtype = jnp.dtype(dtype_name)
    n = rows * lane_w
    grid = (pl.cdiv(rows, tile_rows),)
    cost = pl.CostEstimate(
        flops=_ACT_FLOPS[post_act] * n,
        transcendentals=0,
        bytes_accessed=3 * n * dtype.itemsize,
    )
    # NOTE: input_output_aliases={0: 0} would remove the output allocation, but
    # it requires the caller to donate main_out (jit boundary); left off for
    # safety since it does not change HBM bytes moved.
    return pl.pallas_call(
        _make_residual_kernel(post_act, dtype),
        out_shape=jax.ShapeDtypeStruct((rows, lane_w), dtype),
        grid_spec=pltpu.PrefetchScalarGridSpec(
            num_scalar_prefetch=0,
            grid=grid,
            in_specs=[
                pl.BlockSpec((tile_rows, lane_w), lambda i: (i, 0)),
                pl.BlockSpec((tile_rows, lane_w), lambda i: (i, 0)),
            ],
            out_specs=pl.BlockSpec((tile_rows, lane_w), lambda i: (i, 0)),
        ),
        compiler_params=pltpu.CompilerParams(
            dimension_semantics=("parallel",),
        ),
        cost_estimate=cost,
    )


# ------------------------------ fused combine --------------------------------
def fused_residual_add(main_out: jax.Array, shortcut_out: jax.Array,
                       post_act=None) -> jax.Array:
    """out = post_act(main_out + shortcut_out); elementwise, any shape."""
    assert main_out.shape == shortcut_out.shape
    assert post_act in _ACTS, f"unsupported post_act: {post_act!r}"
    dtype = jnp.result_type(main_out.dtype, shortcut_out.dtype)
    main_out = main_out.astype(dtype)
    shortcut_out = shortcut_out.astype(dtype)
    orig_shape = main_out.shape
    itemsize = jnp.dtype(dtype).itemsize
    n = main_out.size

    lane_w = _pick_lane_width(n)
    if lane_w is None or n * itemsize < _SMALL_FAST_PATH_BYTES:
        # Small tensors: kernel fixed cost dominates.  Ragged tensors (size
        # not a multiple of 128): the old jnp.pad path doubled HBM traffic;
        # one XLA-fused pass is bandwidth-optimal for this elementwise op.
        return _xla_residual(main_out, shortcut_out, post_act)

    rows = n // lane_w
    sublane = _sublane_for(itemsize)

    # ~2 MiB blocks, sublane-granular rows.
    max_tile_rows = max(
        sublane,
        (_TARGET_BLOCK_BYTES // (lane_w * itemsize)) // sublane * sublane)
    # >= 2 grid steps whenever splittable so both v7x TensorCores get work;
    # round odd step counts up so the masked trailing block stays balanced.
    min_blocks = 2 if rows > sublane else 1
    num_blocks = max(min_blocks, pl.cdiv(rows, max_tile_rows))
    if num_blocks > 1 and num_blocks % 2 == 1:
        num_blocks += 1
    tile_rows = max(sublane, _round_up(pl.cdiv(rows, num_blocks), sublane))

    call = _build_residual_call(rows, lane_w, tile_rows,
                                str(jnp.dtype(dtype)), post_act)
    out2d = call(main_out.reshape(rows, lane_w),
                 shortcut_out.reshape(rows, lane_w))
    return out2d.reshape(orig_shape)


# --------------------------- ResidualBlock forward ----------------------------
def residual_block_forward(x: jax.Array,
                           main_fn=None,
                           shortcut_fn=None,
                           post_act=None,
                           pre_norm_fn=None) -> jax.Array:
    """Mirrors ResidualBlock.forward.

    main_fn / shortcut_fn / pre_norm_fn are the user-supplied sub-modules,
    passed as plain JAX callables; the residual combine + optional post_act is
    fused into one Pallas kernel.
    """
    # TODO(synk): main/shortcut/pre_norm are arbitrary nn.Modules in the PyTorch
    # spec (conv blocks, norms, ...); only ResidualBlock's own combine+post_act
    # is a Pallas kernel here.
    # TODO(synk): when main_fn's final op is itself a Pallas kernel (conv /
    # matmul), fuse the residual add + post_act into that kernel's epilogue to
    # delete this kernel's 3*n*itemsize HBM round trip entirely.
    if main_fn is None:
        return x
    h = x if pre_norm_fn is None else pre_norm_fn(x)
    main_out = main_fn(h)
    if shortcut_fn is None:
        return main_out
    short_out = shortcut_fn(x)
    return fused_residual_add(main_out, short_out, post_act=post_act)


# ----------------------------------- demo ------------------------------------
if __name__ == "__main__":
    key = jax.random.PRNGKey(0)
    k1, k2, k3, k4 = jax.random.split(key, 4)

    def ref_combine(a, b, post_act):
        y = a + b
        if post_act == "hswish":
            y = y * jnp.clip(y + 3.0, 0.0, 6.0) / 6.0
        elif post_act == "relu6":
            y = jnp.clip(y, 0.0, 6.0)
        elif post_act == "relu":
            y = jnp.maximum(y, 0.0)
        return y

    # --- small canonical shape: full ResidualBlock forward (fast path). ------
    B, C, H, W = 2, 4, 16, 16
    x = jax.random.normal(k1, (B, C, H, W), dtype=jnp.float32)
    w = jax.random.normal(k2, (1, C, 1, 1), dtype=jnp.float32)
    b = jax.random.normal(k3, (1, C, 1, 1), dtype=jnp.float32)
    main_fn = lambda t: t * w + b          # stand-in for the "main" sub-module
    shortcut_fn = lambda t: t              # identity shortcut (common config)

    out = jax.block_until_ready(
        residual_block_forward(x, main_fn, shortcut_fn, post_act="hswish"))
    ref = ref_combine(main_fn(x), x, "hswish")
    assert out.shape == x.shape and out.dtype == x.dtype
    assert jnp.allclose(out, ref, atol=1e-5, rtol=1e-5)

    # main is None -> identity passthrough; shortcut None -> main only.
    assert jnp.allclose(residual_block_forward(x, None, shortcut_fn), x)
    assert jnp.allclose(residual_block_forward(x, main_fn, None), main_fn(x),
                        atol=1e-5, rtol=1e-5)

    # --- larger f32 slab: exercises the Pallas kernel (grid >= 2). -----------
    xl = jax.random.normal(k4, (2, 32, 64, 64), dtype=jnp.float32)   # 1 MiB
    ml = xl * 0.5 + 0.25
    out_l = jax.block_until_ready(fused_residual_add(ml, xl, post_act="hswish"))
    ref_l = ref_combine(ml, xl, "hswish")
    assert jnp.allclose(out_l, ref_l, atol=1e-5, rtol=1e-5)

    out_l2 = jax.block_until_ready(fused_residual_add(ml, xl, post_act=None))
    assert jnp.allclose(out_l2, ml + xl, atol=1e-5, rtol=1e-5)

    # --- bf16 native path (no f32 upcast inside the kernel). -----------------
    xb = jax.random.normal(key, (2, 64, 64, 64), dtype=jnp.float32)  # 1 MiB bf16
    mb = (xb * 0.5 + 0.25).astype(jnp.bfloat16)
    xb = xb.astype(jnp.bfloat16)
    out_b = jax.block_until_ready(fused_residual_add(mb, xb, post_act="relu6"))
    ref_b = ref_combine(mb.astype(jnp.float32), xb.astype(jnp.float32), "relu6")
    assert out_b.dtype == jnp.bfloat16
    assert jnp.allclose(out_b.astype(jnp.float32), ref_b, atol=1e-1, rtol=5e-2)

    print("KERNEL_OK")
</pallas_src>

<mosaic_0001>
module attributes {stable_mosaic.version = 11 : i64} {
  func.func @kernel(%arg0: i32, %arg1: memref<16x8192xf32, #tpu.memory_space<vmem>>, %arg2: memref<16x8192xf32, #tpu.memory_space<vmem>>, %arg3: memref<16x8192xf32, #tpu.memory_space<vmem>>) attributes {dimension_semantics = [#tpu.dimension_semantics<parallel>], iteration_bounds = array<i64: 2>, scalar_prefetch = 0 : i64, scratch_operands = 0 : i64, tpu.core_type = #tpu.core_type<tc>, window_params = [{transform_indices = @transform_0, window_bounds = array<i64: 16, 8192>}, {transform_indices = @transform_1, window_bounds = array<i64: 16, 8192>}, {transform_indices = @transform_2, window_bounds = array<i64: 16, 8192>}]} {
    %c0 = arith.constant 0 : index
    %c0_0 = arith.constant 0 : index
    %0 = vector.load %arg1[%c0, %c0_0] : memref<16x8192xf32, #tpu.memory_space<vmem>>, vector<16x8192xf32>
    %c0_1 = arith.constant 0 : index
    %c0_2 = arith.constant 0 : index
    %1 = vector.load %arg2[%c0_1, %c0_2] : memref<16x8192xf32, #tpu.memory_space<vmem>>, vector<16x8192xf32>
    %2 = arith.addf %0, %1 : vector<16x8192xf32>
    %cst = arith.constant 3.000000e+00 : f32
    %3 = vector.broadcast %cst : f32 to vector<16x8192xf32>
    %4 = arith.addf %2, %3 : vector<16x8192xf32>
    %cst_3 = arith.constant 0.000000e+00 : f32
    %cst_4 = arith.constant 6.000000e+00 : f32
    %5 = vector.broadcast %cst_3 : f32 to vector<16x8192xf32>
    %6 = arith.maximumf %5, %4 : vector<16x8192xf32>
    %7 = vector.broadcast %cst_4 : f32 to vector<16x8192xf32>
    %8 = arith.minimumf %7, %6 : vector<16x8192xf32>
    %9 = arith.mulf %2, %8 : vector<16x8192xf32>
    %cst_5 = arith.constant 0.166666672 : f32
    %10 = vector.broadcast %cst_5 : f32 to vector<16x8192xf32>
    %11 = arith.mulf %9, %10 : vector<16x8192xf32>
    %c0_6 = arith.constant 0 : index
    %c0_7 = arith.constant 0 : index
    %12 = vector.load %arg3[%c0_6, %c0_7] : memref<16x8192xf32, #tpu.memory_space<vmem>>, vector<16x8192xf32>
    tpu.vector_store %arg3[%c0_6, %c0_7], %11 {strides = array<i32>} : memref<16x8192xf32, #tpu.memory_space<vmem>>, vector<16x8192xf32>,
    return
  }
  func.func @transform_0(%arg0: i32) -> (i32, i32) {
    %c0_i32 = arith.constant 0 : i32
    %c0_i32_0 = arith.constant 0 : i32
    return %arg0, %c0_i32 : i32, i32
  }
  func.func @transform_1(%arg0: i32) -> (i32, i32) {
    %c0_i32 = arith.constant 0 : i32
    %c0_i32_0 = arith.constant 0 : i32
    return %arg0, %c0_i32 : i32, i32
  }
  func.func @transform_2(%arg0: i32) -> (i32, i32) {
    %c0_i32 = arith.constant 0 : i32
    %c0_i32_0 = arith.constant 0 : i32
    return %arg0, %c0_i32 : i32, i32
  }
}

</mosaic_0001>

<bundles_post_ra>
// kernel: tpu_custom_call.1
= control target key start
LH: loop header
LB: loop body
LE: loop exit
PB: predicated region body
PF: predicated region fallthrough
CT: control target
= control target key end

     0   :  { %7 = vsyncpa [#allocation3], 0  ;;  %s2325_s0 = inlined_call_operand.hbm [shape: f32[32,8192], index: 0, kind: input, shape index: {}]   ;;  %s2326_s1 = inlined_call_operand.hbm [shape: f32[32,8192], index: 1, kind: input, shape index: {}]   ;;  %s2327_s2 = inlined_call_operand.hbm [shape: f32[32,8192], index: 2, kind: output, shape index: {}]  }
   0x1   :  { %9 = vsyncpa [#allocation3 + $0x1], 0 }
   0x2   :  { %10 = vsyncpa [#allocation6], 0 }
   0x3   :  { %12 = vsyncpa [#allocation6 + $0x1], 0 }
   0x4   :  { %13 = vsyncpa [#allocation4], 0 }
   0x5   :  { %15 = vsyncpa [#allocation4 + $0x1], 0  ;;  %s1706_s9 = smov 0   ;;  %s1708_s10 = smov 0  }
   0x6   :  { %s1710_s11 = smov 0   ;;  %s1712_s12 = smov 0  }
   0x7 LB: > { %s1727_s13 = sadd.s32 4294967295, %s1682_s12   ;;  %s1470_s14 = sadd.s32 4294967294, %s1682_s12   ;;  %s1682_s12 = sphi %s1712_s12, %s2343_s12   ;;  %s1678_s11 = sphi %s1710_s11, %s2342_s11   ;;  %s1674_s10 = sphi %s1708_s10, %s2341_s10   ;;  %s1670_s9 = sphi %s1706_s9, %s2340_s9  }
   0x8   : > { %s1731_s15 = sadd.s32 1, %s1682_s12   ;;  %s28_s16 = sadd.s32 1, %s1678_s11 }
   0x9   : > { %s25_s17 = ssub.s32 %s1682_s12, %s1731_s15  ;;  %p35_p0 = scmp.ne.s32.totalorder %s1678_s11, %s1674_s10 }
   0xa   : > { %p26_p1 = scmp.eq.s32.totalorder %s25_s17, 0  ;;  %p36_p2 = scmp.eq.s32.totalorder %s1682_s12, 0 }
   0xb   : > { %p41_p3 = scmp.ne.s32.totalorder %s1674_s10, %s1670_s9  ;;  %p42_p4 = scmp.eq.s32.totalorder %s1727_s13, 0 }
   0xc   : > { %s1743_s18 = scalar_select %p26_p1, %s1678_s11, %s28_s16  }
   0xd   : > { %p1745_p5 = por %p36_p2, %p35_p0  ;;  %p1749_p6 = por %p42_p4, %p41_p3 }
   0xe   : > { %p91_p7 = scmp.eq.s32.totalorder %s1727_s13, 1  ;;  %p97_p8 = scmp.eq.s32.totalorder %s1470_s14, 1 }
   0xf   : > { %s2331_s20 = scalar_select %p1749_p6, 1, 0 }
  0x10   : > { %p1514_p10 = scmp.lt.s32.totalorder %s1682_s12, 2  ;;  %p1756_p11 = por %p91_p7, %p35_p0 }
  0x11   : > { %p1760_p12 = por %p97_p8, %p41_p3  ;;  %s1765_s23 = sand.u32 1, %s1678_s11  }
  0x12   : > { %s2332_s21 = scalar_select %p1756_p11, 1, 0 }
  0x13   : > { %s2333_s22 = scalar_select %p1760_p12, 1, 0 }
  0x14   : > { %s1492_s24 = sshll.u32 %s1682_s12, 14  ;;  %s1473_s25 = sshll.u32 %s1765_s23, 10 }
  0x15   : > { %s1774_s28 = scalar_lea.hbm %s2325_s0, %s1492_s24  ;;  %s121_s29 = scalar_lea.vmem [#allocation2], %s1473_s25 }
  0x16   : > { %s129_s30 = sshll.u32 %s121_s29, 4  ;;  %p1780_p13 = pnand %p1514_p10, %p1745_p5  ;;  %s1784_s30 = int_to_ptr.vmem [resolvable:$true] %s129_s30 }
  0x17   : > { %s118_s4 = scalar_lea.sflag [#allocation3], %s1765_s23  ;;  %s1552_s5 = scalar_lea.hbm %s1774_s28, 16384 }
  0x18   : > { %p1553_p0 = scmp.ne.s32.totalorder %s1774_s28, %s1552_s5  ;;  %p1554_p1 = pneg %p1780_p13 }
  0x19   : > { %s1557_s8 = scalar_lea.hbm %s2325_s0, 32768  ;;  %p1558_p4 = scmp.lt.u32.totalorder %s1774_s28, %s2325_s0 }
  0x1a   : > { %p1555_p2 = pnand %p1554_p1, %p1553_p0  ;;  %p1559_p5 = scmp.lt.u32.totalorder %s1557_s8, %s1552_s5 }
  0x1b   : > { %p1561_p8 = scmp.lt.u32.totalorder %s1552_s5, %s1774_s28 }
  0x1c   : > { %p1556_p3 = pneg %p1555_p2  ;;  %p1560_p7 = por %p1559_p5, %p1558_p4 }
  0x1e   : > { %p1562_p10 = por %p1561_p8, %p1560_p7 }
  0x20   : > { %p1563_p9 = pnand %p1562_p10, %p1556_p3 }
  0x22   : > { %1566 = shalt.err (!%p1563_p9)
}
  0x23   : > { %s1567_s17 = scalar_lea.vmem %s1784_s30, 16384  ;;  %s1684_s19 = smov [#allocation2]  }
  0x24   : > { %p1568_p0 = scmp.ne.s32.totalorder %s1784_s30, %s1567_s17  ;;  %s1572_s26 = sshll.u32 %s1684_s19, 4  ;;  %s1573_s26 = int_to_ptr.vmem [resolvable:$false] %s1572_s26 }
  0x25   : > { %s1574_s27 = scalar_lea.vmem %s1573_s26, 32768  ;;  %p1575_p11 = scmp.lt.s32.totalorder %s1784_s30, %s1573_s26 }
  0x26   : > { %p1570_p2 = pnand %p1568_p0, %p1554_p1  ;;  %p1576_p4 = scmp.lt.s32.totalorder %s1574_s27, %s1567_s17 }
  0x28   : > { %p1571_p12 = pneg %p1570_p2  ;;  %p1577_p5 = por %p1576_p4, %p1575_p11 }
  0x2a   : > { %p1578_p7 = pnand %p1577_p5, %p1571_p12 }
  0x2c   : > { %1581 = shalt.err (!%p1578_p7)
}
  0x2d   : > { %s1685_s29 = smov 8192   ;;  %s1686_s5 = smov 512  }
  0x2e   : > { %1506 = dma.hbm_to_vmem [thread:$0]  (!%p1780_p13), %s1774_s28, 16384, %s1784_s30, %s118_s4, %s1685_s29, %s1685_s29, %s1686_s5  }
  0x2f   : > { %p1481_p9 = scmp.ge.s32.totalorder %s1682_s12, 1  ;;  %p159_p11 = scmp.lt.s32.totalorder %s1682_s12, 3 }
  0x30   : > { %s1828_s14 = scalar_lea.hbm %s2326_s1, %s1492_s24  ;;  %s143_s16 = scalar_lea.vmem [#allocation5], %s1473_s25 }
  0x31   : > { %p1819_p12 = pnand %p1481_p9, %p159_p11  ;;  %s151_s17 = sshll.u32 %s143_s16, 4  ;;  %s1832_s17 = int_to_ptr.vmem [resolvable:$true] %s151_s17 }
  0x32   : > { %s140_s28 = scalar_lea.sflag [#allocation6], %s1765_s23  ;;  %s1582_s30 = scalar_lea.hbm %s1828_s14, 16384 }
  0x33   : > { %p1583_p3 = scmp.ne.s32.totalorder %s1828_s14, %s1582_s30  ;;  %s1587_s24 = scalar_lea.hbm %s2326_s1, 32768 }
  0x34   : > { %p1588_p0 = scmp.lt.u32.totalorder %s1828_s14, %s2326_s1  ;;  %p1589_p2 = scmp.lt.u32.totalorder %s1587_s24, %s1582_s30 }
  0x35   : > { %p1585_p8 = pnand %p1583_p3, %p1554_p1  ;;  %p1591_p5 = scmp.lt.u32.totalorder %s1582_s30, %s1828_s14 }
  0x36   : > { %p1590_p4 = por %p1589_p2, %p1588_p0 }
  0x37   : > { %p1586_p10 = pneg %p1585_p8 }
  0x38   : > { %p1592_p7 = por %p1591_p5, %p1590_p4 }
  0x3a   : > { %p1593_p9 = pnand %p1592_p7, %p1586_p10 }
  0x3c   : > { %1596 = shalt.err (!%p1593_p9)
}
  0x3d   : > { %s1597_s25 = scalar_lea.vmem %s1832_s17, 16384  ;;  %s1687_s7 = smov [#allocation5]  }
  0x3e   : > { %p1598_p11 = scmp.ne.s32.totalorder %s1832_s17, %s1597_s25  ;;  %s1602_s8 = sshll.u32 %s1687_s7, 4  ;;  %s1603_s8 = int_to_ptr.vmem [resolvable:$false] %s1602_s8 }
  0x3f   : > { %s1604_s16 = scalar_lea.vmem %s1603_s8, 32768  ;;  %p1605_p6 = scmp.lt.s32.totalorder %s1832_s17, %s1603_s8 }
  0x40   : > { %p1600_p3 = pnand %p1598_p11, %p1554_p1  ;;  %p1606_p0 = scmp.lt.s32.totalorder %s1604_s16, %s1597_s25 }
  0x42   : > { %p1601_p8 = pneg %p1600_p3  ;;  %p1607_p2 = por %p1606_p0, %p1605_p6 }
  0x44   : > { %p1608_p4 = pnand %p1607_p2, %p1601_p8 }
  0x46   : > { %1611 = shalt.err (!%p1608_p4)
}
  0x47   : > { %1509 = dma.hbm_to_vmem [thread:$0]  (!%p1780_p13), %s1828_s14, 16384, %s1832_s17, %s140_s28, %s1685_s29, %s1685_s29, %s1686_s5  }
  0x48   : > { %163 = sbr.rel (%p1819_p12) target bundleno = 296 (0x128), region = 28  ;;  %s1866_s30 = sand.u32 (!%p1819_p12), 1, %s1674_s10  }
  0x49   : > { %s1869_s4 = sshll.u32 (!%p1819_p12), %s1866_s30, 10  ;;  %s166_s3 = scalar_lea.sflag (!%p1819_p12), [#allocation3], %s1866_s30 }
  0x4a   : > { %s1873_s19 = scalar_lea.vmem (!%p1819_p12), [#allocation2], %s1869_s4  ;;  %p2336_p6 = scmp.ne.s32.totalorder (!%p1819_p12), %s2331_s20, 0 }
  0x4f   : > { %1657 = dma.done.wait (%p2336_p6), %s166_s3, 16384  }
  0x50   : > { %1659 = vsyncadd (%p2336_p6), %s166_s3, 4294950912  ;;  %s175_s23 = scalar_lea.sflag [#allocation6], %s1866_s30  ;;  %s1881_s29 = scalar_lea.vmem [#allocation5], %s1869_s4 }
  0x51   : > { %1661 = dma.done.wait (%p2336_p6), %s175_s23, 16384  }
  0x52   : > { %1663 = vsyncadd (%p2336_p6), %s175_s23, 4294950912  ;;  %v207_v0 = vld [vmem:[%s1873_s19] sm:$0xff]  ;;  %v208_v2 = vld [vmem:[%s1873_s19 + $0x8] sm:$0xff]  ;;  %s1913_s20 = scalar_lea.vmem [#allocation7], %s1869_s4  ;;  %s1496_s5 = sshll.u32 %s1727_s13, 14 }
  0x53   : > { %v335_v1 = vld [vmem:[%s1881_s29] sm:$0xff]  ;;  %v336_v4 = vld [vmem:[%s1881_s29 + $0x8] sm:$0xff]  ;;  %v209_v5 = vld [vmem:[%s1873_s19 + $0x10] sm:$0xff]  ;;  %s1374_s6 = sshll.u32 %s1913_s20, 4  ;;  %s2275_s13 = scalar_lea.hbm %s2327_s2, %s1496_s5  ;;  %s2279_s6 = int_to_ptr.vmem [resolvable:$true] %s1374_s6 }
  0x54   : > { %v463_v3 = vadd.f32 %v335_v1, %v207_v0  ;;  %v337_v6 = vld [vmem:[%s1881_s29 + $0x10] sm:$0xff]  ;;  %v464_v7 = vadd.f32 %v336_v4, %v208_v2  ;;  %v210_v9 = vld [vmem:[%s1873_s19 + $0x18] sm:$0xff]  ;;  %v211_v11 = vld [vmem:[%s1873_s19 + $0x20] sm:$0xff]  ;;  %s1360_s28 = scalar_lea.sflag [#allocation4], %s1866_s30  ;;  %s1612_s24 = scalar_lea.vmem %s2279_s6, 16384 }
  0x55   : > { %v465_v8 = vadd.f32 %v337_v6, %v209_v5  ;;  %v338_v10 = vld [vmem:[%s1881_s29 + $0x18] sm:$0xff]  ;;  %v339_v14 = vld [vmem:[%s1881_s29 + $0x20] sm:$0xff]  ;;  %v212_v15 = vld [vmem:[%s1873_s19 + $0x28] sm:$0xff]  ;;  %p1613_p13 = scmp.ne.s32.totalorder %s2279_s6, %s1612_s24  ;;  %p2337_p1 = scmp.ne.s32.totalorder %s2332_s21, 0 }
  0x56   : > { %v591_v12 = vadd.f32 3.0, %v463_v3  ;;  %v466_v13 = vadd.f32 %v338_v10, %v210_v9  ;;  %v340_v16 = vld [vmem:[%s1881_s29 + $0x28] sm:$0xff]  ;;  %v592_v17 = vadd.f32 3.0, %v464_v7  ;;  %v467_v19 = vadd.f32 %v339_v14, %v211_v11  ;;  %v213_v21 = vld [vmem:[%s1873_s19 + $0x30] sm:$0xff]  ;;  %v214_v23 = vld [vmem:[%s1873_s19 + $0x38] sm:$0xff]  ;;  %s1688_s26 = smov [#allocation7]  }
  0x57   : > { %v593_v18 = vadd.f32 3.0, %v465_v8  ;;  %v468_v20 = vadd.f32 %v340_v16, %v212_v15  ;;  %v341_v22 = vld [vmem:[%s1881_s29 + $0x30] sm:$0xff]  ;;  %v342_v27 = vld [vmem:[%s1881_s29 + $0x38] sm:$0xff]  ;;  %v215_v44 = vld [vmem:[%s1873_s19 + $0x40] sm:$0xff]  ;;  %p1614_p12 = pnand %p1613_p13, %p2337_p1  ;;  %s1616_s27 = sshll.u32 %s1688_s26, 4  ;;  %s1617_s27 = int_to_ptr.vmem [resolvable:$false] %s1616_s27 }
  0x58   : > { %v719_v24 = vmax.f32 %v591_v12, 0.0  ;;  %v594_v25 = vadd.f32 3.0, %v466_v13  ;;  %v469_v26 = vadd.f32 %v341_v22, %v213_v21  ;;  %v720_v28 = vmax.f32 %v592_v17, 0.0  ;;  %v343_v45 = vld [vmem:[%s1881_s29 + $0x40] sm:$0xff]  ;;  %v216_v50 = vld [vmem:[%s1873_s19 + $0x48] sm:$0xff]  ;;  %v217_v52 = vld [vmem:[%s1873_s19 + $0x50] sm:$0xff]  ;;  %p1619_p5 = scmp.lt.s32.totalorder %s2279_s6, %s1617_s27 }
  0x59   : > { %v721_v29 = vmax.f32 %v593_v18, 0.0  ;;  %v595_v30 = vadd.f32 3.0, %v467_v19  ;;  %v596_v31 = vadd.f32 3.0, %v468_v20  ;;  %v470_v35 = vadd.f32 %v342_v27, %v214_v23  ;;  %v344_v51 = vld [vmem:[%s1881_s29 + $0x48] sm:$0xff]  ;;  %v345_v57 = vld [vmem:[%s1881_s29 + $0x50] sm:$0xff]  ;;  %v218_v58 = vld [vmem:[%s1873_s19 + $0x58] sm:$0xff]  ;;  %p1615_p10 = pneg %p1614_p12 }
  0x5a   : > { %v847_v32 = vmin.f32 %v719_v24, 6.0  ;;  %v722_v33 = vmax.f32 %v594_v25, 0.0  ;;  %v597_v34 = vadd.f32 3.0, %v469_v26  ;;  %v848_v36 = vmin.f32 %v720_v28, 6.0  ;;  %v346_v63 = vld [vmem:[%s1881_s29 + $0x58] sm:$0xff]  ;;  %v219_v0 = vld [vmem:[%s1873_s19 + $0x60] sm:$0xff] }
  0x5b   : > { %v849_v37 = vmin.f32 %v721_v29, 6.0  ;;  %v723_v38 = vmax.f32 %v595_v30, 0.0  ;;  %v724_v39 = vmax.f32 %v596_v31, 0.0  ;;  %v598_v43 = vadd.f32 3.0, %v470_v35  ;;  %v347_v5 = vld [vmem:[%s1881_s29 + $0x60] sm:$0xff]  ;;  %v220_v6 = vld [vmem:[%s1873_s19 + $0x68] sm:$0xff] }
  0x5c   : > { %v975_v40 = vmul.f32 %v847_v32, %v463_v3  ;;  %v850_v41 = vmin.f32 %v722_v33, 6.0  ;;  %v725_v42 = vmax.f32 %v597_v34, 0.0  ;;  %v976_v46 = vmul.f32 %v848_v36, %v464_v7  ;;  %v348_v7 = vld [vmem:[%s1881_s29 + $0x68] sm:$0xff]  ;;  %v221_v12 = vld [vmem:[%s1873_s19 + $0x70] sm:$0xff]  ;;  %v222_v22 = vld [vmem:[%s1873_s19 + $0x78] sm:$0xff]  ;;  %s1618_s25 = scalar_lea.vmem %s1617_s27, 32768 }
  0x5d   : > { %v977_v47 = vmul.f32 %v849_v37, %v465_v8  ;;  %v851_v48 = vmin.f32 %v723_v38, 6.0  ;;  %v852_v49 = vmin.f32 %v724_v39, 6.0  ;;  %v726_v56 = vmax.f32 %v598_v43, 0.0  ;;  %v350_v23 = vld [vmem:[%s1881_s29 + $0x78] sm:$0xff]  ;;  %p1620_p7 = scmp.lt.s32.totalorder %s1618_s25, %s1612_s24 }
  0x5e   : > { %v1103_v53 = vmul.f32 0.16666667, %v975_v40  ;;  %v978_v54 = vmul.f32 %v850_v41, %v466_v13  ;;  %v853_v55 = vmin.f32 %v725_v42, 6.0  ;;  %v1104_v59 = vmul.f32 0.16666667, %v976_v46  ;;  %v349_v13 = vld [vmem:[%s1881_s29 + $0x70] sm:$0xff] }
  0x5f   : > { %v1105_v60 = vmul.f32 0.16666667, %v977_v47  ;;  %v979_v61 = vmul.f32 %v851_v48, %v467_v19  ;;  %v980_v62 = vmul.f32 %v852_v49, %v468_v20  ;;  %v854_v3 = vmin.f32 %v726_v56, 6.0  ;;  %p1621_p9 = por %p1620_p7, %p1619_p5 }
  0x60   : > { %1231 = vst [vmem:[%s1913_s20] sm:$0xff] %v1103_v53  ;;  %v1106_v1 = vmul.f32 0.16666667, %v978_v54  ;;  %v981_v2 = vmul.f32 %v853_v55, %v469_v26  ;;  %v471_v4 = vadd.f32 %v343_v45, %v215_v44  ;;  %1232 = vst [vmem:[%s1913_s20 + $0x8] sm:$0xff] %v1104_v59  ;;  %v472_v10 = vadd.f32 %v344_v51, %v216_v50  ;;  %v223_v44 = vld [vmem:[%s1873_s19 + $0x80] sm:$0xff]  ;;  %v224_v50 = vld [vmem:[%s1873_s19 + $0x88] sm:$0xff] }
  0x61   : > { %1233 = vst [vmem:[%s1913_s20 + $0x10] sm:$0xff] %v1105_v60  ;;  %v1107_v8 = vmul.f32 0.16666667, %v979_v61  ;;  %v1108_v9 = vmul.f32 0.16666667, %v980_v62  ;;  %v473_v11 = vadd.f32 %v345_v57, %v217_v52  ;;  %v982_v15 = vmul.f32 %v854_v3, %v470_v35  ;;  %v351_v45 = vld [vmem:[%s1881_s29 + $0x80] sm:$0xff]  ;;  %p1622_p11 = pnand %p1621_p9, %p1615_p10 }
  0x62   : > { %1234 = vst [vmem:[%s1913_s20 + $0x18] sm:$0xff] %v1106_v1  ;;  %v1109_v14 = vmul.f32 0.16666667, %v981_v2  ;;  %v599_v16 = vadd.f32 3.0, %v471_v4  ;;  %v474_v17 = vadd.f32 %v346_v63, %v218_v58  ;;  %v600_v18 = vadd.f32 3.0, %v472_v10  ;;  %v352_v51 = vld [vmem:[%s1881_s29 + $0x88] sm:$0xff] }
  0x63   : > { %1235 = vst [vmem:[%s1913_s20 + $0x20] sm:$0xff] %v1107_v8  ;;  %1236 = vst [vmem:[%s1913_s20 + $0x28] sm:$0xff] %v1108_v9  ;;  %v601_v19 = vadd.f32 3.0, %v473_v11  ;;  %v475_v20 = vadd.f32 %v347_v5, %v219_v0  ;;  %v476_v21 = vadd.f32 %v348_v7, %v220_v6  ;;  %v1110_v24 = vmul.f32 0.16666667, %v982_v15  ;;  %v225_v52 = vld [vmem:[%s1873_s19 + $0x90] sm:$0xff] }
  0x64   : > { %1237 = vst [vmem:[%s1913_s20 + $0x30] sm:$0xff] %v1109_v14  ;;  %v727_v25 = vmax.f32 %v599_v16, 0.0  ;;  %v602_v26 = vadd.f32 3.0, %v474_v17  ;;  %v477_v27 = vadd.f32 %v349_v13, %v221_v12  ;;  %v728_v28 = vmax.f32 %v600_v18, 0.0  ;;  %v353_v57 = vld [vmem:[%s1881_s29 + $0x90] sm:$0xff]  ;;  %v226_v58 = vld [vmem:[%s1873_s19 + $0x98] sm:$0xff] }
  0x65   : > { %v729_v29 = vmax.f32 %v601_v19, 0.0  ;;  %v603_v30 = vadd.f32 3.0, %v475_v20  ;;  %v604_v31 = vadd.f32 3.0, %v476_v21  ;;  %1238 = vst [vmem:[%s1913_s20 + $0x38] sm:$0xff] %v1110_v24  ;;  %v478_v35 = vadd.f32 %v350_v23, %v222_v22  ;;  %v354_v63 = vld [vmem:[%s1881_s29 + $0x98] sm:$0xff]  ;;  %v227_v0 = vld [vmem:[%s1873_s19 + $0xa0] sm:$0xff] }
  0x66   : > { %v855_v32 = vmin.f32 %v727_v25, 6.0  ;;  %v730_v33 = vmax.f32 %v602_v26, 0.0  ;;  %v605_v34 = vadd.f32 3.0, %v477_v27  ;;  %v856_v36 = vmin.f32 %v728_v28, 6.0  ;;  %v355_v5 = vld [vmem:[%s1881_s29 + $0xa0] sm:$0xff]  ;;  %v228_v6 = vld [vmem:[%s1873_s19 + $0xa8] sm:$0xff] }
  0x67   : > { %v857_v37 = vmin.f32 %v729_v29, 6.0  ;;  %v731_v38 = vmax.f32 %v603_v30, 0.0  ;;  %v732_v39 = vmax.f32 %v604_v31, 0.0  ;;  %v606_v43 = vadd.f32 3.0, %v478_v35  ;;  %v356_v7 = vld [vmem:[%s1881_s29 + $0xa8] sm:$0xff]  ;;  %v229_v12 = vld [vmem:[%s1873_s19 + $0xb0] sm:$0xff] }
  0x68   : > { %v983_v40 = vmul.f32 %v855_v32, %v471_v4  ;;  %v858_v41 = vmin.f32 %v730_v33, 6.0  ;;  %v733_v42 = vmax.f32 %v605_v34, 0.0  ;;  %v984_v46 = vmul.f32 %v856_v36, %v472_v10  ;;  %v357_v13 = vld [vmem:[%s1881_s29 + $0xb0] sm:$0xff]  ;;  %v230_v22 = vld [vmem:[%s1873_s19 + $0xb8] sm:$0xff] }
  0x69   : > { %v985_v47 = vmul.f32 %v857_v37, %v473_v11  ;;  %v859_v48 = vmin.f32 %v731_v38, 6.0  ;;  %v860_v49 = vmin.f32 %v732_v39, 6.0  ;;  %v734_v56 = vmax.f32 %v606_v43, 0.0  ;;  %v358_v23 = vld [vmem:[%s1881_s29 + $0xb8] sm:$0xff] }
  0x6a   : > { %v1111_v53 = vmul.f32 0.16666667, %v983_v40  ;;  %v986_v54 = vmul.f32 %v858_v41, %v474_v17  ;;  %v861_v55 = vmin.f32 %v733_v42, 6.0  ;;  %v1112_v59 = vmul.f32 0.16666667, %v984_v46 }
  0x6b   : > { %v1113_v60 = vmul.f32 0.16666667, %v985_v47  ;;  %v987_v61 = vmul.f32 %v859_v48, %v475_v20  ;;  %v988_v62 = vmul.f32 %v860_v49, %v476_v21  ;;  %v862_v3 = vmin.f32 %v734_v56, 6.0 }
  0x6c   : > { %1239 = vst [vmem:[%s1913_s20 + $0x40] sm:$0xff] %v1111_v53  ;;  %v1114_v1 = vmul.f32 0.16666667, %v986_v54  ;;  %v989_v2 = vmul.f32 %v861_v55, %v477_v27  ;;  %v479_v4 = vadd.f32 %v351_v45, %v223_v44  ;;  %1240 = vst [vmem:[%s1913_s20 + $0x48] sm:$0xff] %v1112_v59  ;;  %v480_v10 = vadd.f32 %v352_v51, %v224_v50  ;;  %v231_v44 = vld [vmem:[%s1873_s19 + $0xc0] sm:$0xff]  ;;  %v232_v50 = vld [vmem:[%s1873_s19 + $0xc8] sm:$0xff] }
  0x6d   : > { %1241 = vst [vmem:[%s1913_s20 + $0x50] sm:$0xff] %v1113_v60  ;;  %v1115_v8 = vmul.f32 0.16666667, %v987_v61  ;;  %v1116_v9 = vmul.f32 0.16666667, %v988_v62  ;;  %v481_v11 = vadd.f32 %v353_v57, %v225_v52  ;;  %v990_v15 = vmul.f32 %v862_v3, %v478_v35  ;;  %v359_v45 = vld [vmem:[%s1881_s29 + $0xc0] sm:$0xff] }
  0x6e   : > { %1242 = vst [vmem:[%s1913_s20 + $0x58] sm:$0xff] %v1114_v1  ;;  %v1117_v14 = vmul.f32 0.16666667, %v989_v2  ;;  %v607_v16 = vadd.f32 3.0, %v479_v4  ;;  %v482_v17 = vadd.f32 %v354_v63, %v226_v58  ;;  %v608_v18 = vadd.f32 3.0, %v480_v10  ;;  %v360_v51 = vld [vmem:[%s1881_s29 + $0xc8] sm:$0xff] }
  0x6f   : > { %1243 = vst [vmem:[%s1913_s20 + $0x60] sm:$0xff] %v1115_v8  ;;  %1244 = vst [vmem:[%s1913_s20 + $0x68] sm:$0xff] %v1116_v9  ;;  %v609_v19 = vadd.f32 3.0, %v481_v11  ;;  %v483_v20 = vadd.f32 %v355_v5, %v227_v0  ;;  %v484_v21 = vadd.f32 %v356_v7, %v228_v6  ;;  %v1118_v24 = vmul.f32 0.16666667, %v990_v15  ;;  %v233_v52 = vld [vmem:[%s1873_s19 + $0xd0] sm:$0xff] }
  0x70   : > { %1245 = vst [vmem:[%s1913_s20 + $0x70] sm:$0xff] %v1117_v14  ;;  %v735_v25 = vmax.f32 %v607_v16, 0.0  ;;  %v610_v26 = vadd.f32 3.0, %v482_v17  ;;  %v485_v27 = vadd.f32 %v357_v13, %v229_v12  ;;  %v736_v28 = vmax.f32 %v608_v18, 0.0  ;;  %v361_v57 = vld [vmem:[%s1881_s29 + $0xd0] sm:$0xff]  ;;  %v234_v58 = vld [vmem:[%s1873_s19 + $0xd8] sm:$0xff] }
  0x71   : > { %v737_v29 = vmax.f32 %v609_v19, 0.0  ;;  %v611_v30 = vadd.f32 3.0, %v483_v20  ;;  %v612_v31 = vadd.f32 3.0, %v484_v21  ;;  %1246 = vst [vmem:[%s1913_s20 + $0x78] sm:$0xff] %v1118_v24  ;;  %v486_v35 = vadd.f32 %v358_v23, %v230_v22  ;;  %v362_v63 = vld [vmem:[%s1881_s29 + $0xd8] sm:$0xff]  ;;  %v235_v0 = vld [vmem:[%s1873_s19 + $0xe0] sm:$0xff] }
  0x72   : > { %v863_v32 = vmin.f32 %v735_v25, 6.0  ;;  %v738_v33 = vmax.f32 %v610_v26, 0.0  ;;  %v613_v34 = vadd.f32 3.0, %v485_v27  ;;  %v864_v36 = vmin.f32 %v736_v28, 6.0  ;;  %v363_v5 = vld [vmem:[%s1881_s29 + $0xe0] sm:$0xff]  ;;  %v236_v6 = vld [vmem:[%s1873_s19 + $0xe8] sm:$0xff] }
  0x73   : > { %v865_v37 = vmin.f32 %v737_v29, 6.0  ;;  %v739_v38 = vmax.f32 %v611_v30, 0.0  ;;  %v740_v39 = vmax.f32 %v612_v31, 0.0  ;;  %v614_v43 = vadd.f32 3.0, %v486_v35  ;;  %v364_v7 = vld [vmem:[%s1881_s29 + $0xe8] sm:$0xff]  ;;  %v237_v12 = vld [vmem:[%s1873_s19 + $0xf0] sm:$0xff] }
  0x74   : > { %v991_v40 = vmul.f32 %v863_v32, %v479_v4  ;;  %v866_v41 = vmin.f32 %v738_v33, 6.0  ;;  %v741_v42 = vmax.f32 %v613_v34, 0.0  ;;  %v992_v46 = vmul.f32 %v864_v36, %v480_v10  ;;  %v365_v13 = vld [vmem:[%s1881_s29 + $0xf0] sm:$0xff]  ;;  %v238_v22 = vld [vmem:[%s1873_s19 + $0xf8] sm:$0xff] }
  0x75   : > { %v993_v47 = vmul.f32 %v865_v37, %v481_v11  ;;  %v867_v48 = vmin.f32 %v739_v38, 6.0  ;;  %v868_v49 = vmin.f32 %v740_v39, 6.0  ;;  %v742_v56 = vmax.f32 %v614_v43, 0.0  ;;  %v366_v23 = vld [vmem:[%s1881_s29 + $0xf8] sm:$0xff] }
  0x76   : > { %v1119_v53 = vmul.f32 0.16666667, %v991_v40  ;;  %v994_v54 = vmul.f32 %v866_v41, %v482_v17  ;;  %v869_v55 = vmin.f32 %v741_v42, 6.0  ;;  %v1120_v59 = vmul.f32 0.16666667, %v992_v46 }
  0x77   : > { %v1121_v60 = vmul.f32 0.16666667, %v993_v47  ;;  %v995_v61 = vmul.f32 %v867_v48, %v483_v20  ;;  %v996_v62 = vmul.f32 %v868_v49, %v484_v21  ;;  %v870_v3 = vmin.f32 %v742_v56, 6.0 }
  0x78   : > { %1247 = vst [vmem:[%s1913_s20 + $0x80] sm:$0xff] %v1119_v53  ;;  %v1122_v1 = vmul.f32 0.16666667, %v994_v54  ;;  %v997_v2 = vmul.f32 %v869_v55, %v485_v27  ;;  %v487_v4 = vadd.f32 %v359_v45, %v231_v44  ;;  %1248 = vst [vmem:[%s1913_s20 + $0x88] sm:$0xff] %v1120_v59  ;;  %v488_v10 = vadd.f32 %v360_v51, %v232_v50  ;;  %v239_v44 = vld [vmem:[%s1873_s19 + $0x100] sm:$0xff]  ;;  %v240_v50 = vld [vmem:[%s1873_s19 + $0x108] sm:$0xff] }
  0x79   : > { %1249 = vst [vmem:[%s1913_s20 + $0x90] sm:$0xff] %v1121_v60  ;;  %v1123_v8 = vmul.f32 0.16666667, %v995_v61  ;;  %v1124_v9 = vmul.f32 0.16666667, %v996_v62  ;;  %v489_v11 = vadd.f32 %v361_v57, %v233_v52  ;;  %v998_v15 = vmul.f32 %v870_v3, %v486_v35  ;;  %v367_v45 = vld [vmem:[%s1881_s29 + $0x100] sm:$0xff] }
  0x7a   : > { %1250 = vst [vmem:[%s1913_s20 + $0x98] sm:$0xff] %v1122_v1  ;;  %v1125_v14 = vmul.f32 0.16666667, %v997_v2  ;;  %v615_v16 = vadd.f32 3.0, %v487_v4  ;;  %v490_v17 = vadd.f32 %v362_v63, %v234_v58  ;;  %v616_v18 = vadd.f32 3.0, %v488_v10  ;;  %v368_v51 = vld [vmem:[%s1881_s29 + $0x108] sm:$0xff] }
  0x7b   : > { %1251 = vst [vmem:[%s1913_s20 + $0xa0] sm:$0xff] %v1123_v8  ;;  %1252 = vst [vmem:[%s1913_s20 + $0xa8] sm:$0xff] %v1124_v9  ;;  %v617_v19 = vadd.f32 3.0, %v489_v11  ;;  %v491_v20 = vadd.f32 %v363_v5, %v235_v0  ;;  %v492_v21 = vadd.f32 %v364_v7, %v236_v6  ;;  %v1126_v24 = vmul.f32 0.16666667, %v998_v15  ;;  %v241_v52 = vld [vmem:[%s1873_s19 + $0x110] sm:$0xff] }
  0x7c   : > { %1253 = vst [vmem:[%s1913_s20 + $0xb0] sm:$0xff] %v1125_v14  ;;  %v743_v25 = vmax.f32 %v615_v16, 0.0  ;;  %v618_v26 = vadd.f32 3.0, %v490_v17  ;;  %v493_v27 = vadd.f32 %v365_v13, %v237_v12  ;;  %v744_v28 = vmax.f32 %v616_v18, 0.0  ;;  %v369_v57 = vld [vmem:[%s1881_s29 + $0x110] sm:$0xff]  ;;  %v242_v58 = vld [vmem:[%s1873_s19 + $0x118] sm:$0xff] }
  0x7d   : > { %v745_v29 = vmax.f32 %v617_v19, 0.0  ;;  %v619_v30 = vadd.f32 3.0, %v491_v20  ;;  %v620_v31 = vadd.f32 3.0, %v492_v21  ;;  %1254 = vst [vmem:[%s1913_s20 + $0xb8] sm:$0xff] %v1126_v24  ;;  %v494_v35 = vadd.f32 %v366_v23, %v238_v22  ;;  %v370_v63 = vld [vmem:[%s1881_s29 + $0x118] sm:$0xff]  ;;  %v243_v0 = vld [vmem:[%s1873_s19 + $0x120] sm:$0xff] }
  0x7e   : > { %v871_v32 = vmin.f32 %v743_v25, 6.0  ;;  %v746_v33 = vmax.f32 %v618_v26, 0.0  ;;  %v621_v34 = vadd.f32 3.0, %v493_v27  ;;  %v872_v36 = vmin.f32 %v744_v28, 6.0  ;;  %v371_v5 = vld [vmem:[%s1881_s29 + $0x120] sm:$0xff]  ;;  %v244_v6 = vld [vmem:[%s1873_s19 + $0x128] sm:$0xff] }
  0x7f   : > { %v873_v37 = vmin.f32 %v745_v29, 6.0  ;;  %v747_v38 = vmax.f32 %v619_v30, 0.0  ;;  %v748_v39 = vmax.f32 %v620_v31, 0.0  ;;  %v622_v43 = vadd.f32 3.0, %v494_v35  ;;  %v372_v7 = vld [vmem:[%s1881_s29 + $0x128] sm:$0xff]  ;;  %v245_v12 = vld [vmem:[%s1873_s19 + $0x130] sm:$0xff] }
  0x80   : > { %v999_v40 = vmul.f32 %v871_v32, %v487_v4  ;;  %v874_v41 = vmin.f32 %v746_v33, 6.0  ;;  %v749_v42 = vmax.f32 %v621_v34, 0.0  ;;  %v1000_v46 = vmul.f32 %v872_v36, %v488_v10  ;;  %v373_v13 = vld [vmem:[%s1881_s29 + $0x130] sm:$0xff]  ;;  %v246_v22 = vld [vmem:[%s1873_s19 + $0x138] sm:$0xff] }
  0x81   : > { %v1001_v47 = vmul.f32 %v873_v37, %v489_v11  ;;  %v875_v48 = vmin.f32 %v747_v38, 6.0  ;;  %v876_v49 = vmin.f32 %v748_v39, 6.0  ;;  %v750_v56 = vmax.f32 %v622_v43, 0.0  ;;  %v374_v23 = vld [vmem:[%s1881_s29 + $0x138] sm:$0xff] }
  0x82   : > { %v1127_v53 = vmul.f32 0.16666667, %v999_v40  ;;  %v1002_v54 = vmul.f32 %v874_v41, %v490_v17  ;;  %v877_v55 = vmin.f32 %v749_v42, 6.0  ;;  %v1128_v59 = vmul.f32 0.16666667, %v1000_v46 }
  0x83   : > { %v1129_v60 = vmul.f32 0.16666667, %v1001_v47  ;;  %v1003_v61 = vmul.f32 %v875_v48, %v491_v20  ;;  %v1004_v62 = vmul.f32 %v876_v49, %v492_v21  ;;  %v878_v3 = vmin.f32 %v750_v56, 6.0 }
  0x84   : > { %1255 = vst [vmem:[%s1913_s20 + $0xc0] sm:$0xff] %v1127_v53  ;;  %v1130_v1 = vmul.f32 0.16666667, %v1002_v54  ;;  %v1005_v2 = vmul.f32 %v877_v55, %v493_v27  ;;  %v495_v4 = vadd.f32 %v367_v45, %v239_v44  ;;  %1256 = vst [vmem:[%s1913_s20 + $0xc8] sm:$0xff] %v1128_v59  ;;  %v496_v10 = vadd.f32 %v368_v51, %v240_v50  ;;  %v247_v44 = vld [vmem:[%s1873_s19 + $0x140] sm:$0xff]  ;;  %v248_v50 = vld [vmem:[%s1873_s19 + $0x148] sm:$0xff] }
  0x85   : > { %1257 = vst [vmem:[%s1913_s20 + $0xd0] sm:$0xff] %v1129_v60  ;;  %v1131_v8 = vmul.f32 0.16666667, %v1003_v61  ;;  %v1132_v9 = vmul.f32 0.16666667, %v1004_v62  ;;  %v497_v11 = vadd.f32 %v369_v57, %v241_v52  ;;  %v1006_v15 = vmul.f32 %v878_v3, %v494_v35  ;;  %v375_v45 = vld [vmem:[%s1881_s29 + $0x140] sm:$0xff] }
  0x86   : > { %1258 = vst [vmem:[%s1913_s20 + $0xd8] sm:$0xff] %v1130_v1  ;;  %v1133_v14 = vmul.f32 0.16666667, %v1005_v2  ;;  %v623_v16 = vadd.f32 3.0, %v495_v4  ;;  %v498_v17 = vadd.f32 %v370_v63, %v242_v58  ;;  %v624_v18 = vadd.f32 3.0, %v496_v10  ;;  %v376_v51 = vld [vmem:[%s1881_s29 + $0x148] sm:$0xff] }
  0x87   : > { %1259 = vst [vmem:[%s1913_s20 + $0xe0] sm:$0xff] %v1131_v8  ;;  %1260 = vst [vmem:[%s1913_s20 + $0xe8] sm:$0xff] %v1132_v9  ;;  %v625_v19 = vadd.f32 3.0, %v497_v11  ;;  %v499_v20 = vadd.f32 %v371_v5, %v243_v0  ;;  %v500_v21 = vadd.f32 %v372_v7, %v244_v6  ;;  %v1134_v24 = vmul.f32 0.16666667, %v1006_v15  ;;  %v249_v52 = vld [vmem:[%s1873_s19 + $0x150] sm:$0xff] }
  0x88   : > { %1261 = vst [vmem:[%s1913_s20 + $0xf0] sm:$0xff] %v1133_v14  ;;  %v751_v25 = vmax.f32 %v623_v16, 0.0  ;;  %v626_v26 = vadd.f32 3.0, %v498_v17  ;;  %v501_v27 = vadd.f32 %v373_v13, %v245_v12  ;;  %v752_v28 = vmax.f32 %v624_v18, 0.0  ;;  %v377_v57 = vld [vmem:[%s1881_s29 + $0x150] sm:$0xff]  ;;  %v250_v58 = vld [vmem:[%s1873_s19 + $0x158] sm:$0xff] }
  0x89   : > { %v753_v29 = vmax.f32 %v625_v19, 0.0  ;;  %v627_v30 = vadd.f32 3.0, %v499_v20  ;;  %v628_v31 = vadd.f32 3.0, %v500_v21  ;;  %1262 = vst [vmem:[%s1913_s20 + $0xf8] sm:$0xff] %v1134_v24  ;;  %v502_v35 = vadd.f32 %v374_v23, %v246_v22  ;;  %v378_v63 = vld [vmem:[%s1881_s29 + $0x158] sm:$0xff]  ;;  %v251_v0 = vld [vmem:[%s1873_s19 + $0x160] sm:$0xff] }
  0x8a   : > { %v879_v32 = vmin.f32 %v751_v25, 6.0  ;;  %v754_v33 = vmax.f32 %v626_v26, 0.0  ;;  %v629_v34 = vadd.f32 3.0, %v501_v27  ;;  %v880_v36 = vmin.f32 %v752_v28, 6.0  ;;  %v379_v5 = vld [vmem:[%s1881_s29 + $0x160] sm:$0xff]  ;;  %v252_v6 = vld [vmem:[%s1873_s19 + $0x168] sm:$0xff] }
  0x8b   : > { %v881_v37 = vmin.f32 %v753_v29, 6.0  ;;  %v755_v38 = vmax.f32 %v627_v30, 0.0  ;;  %v756_v39 = vmax.f32 %v628_v31, 0.0  ;;  %v630_v43 = vadd.f32 3.0, %v502_v35  ;;  %v380_v7 = vld [vmem:[%s1881_s29 + $0x168] sm:$0xff]  ;;  %v253_v12 = vld [vmem:[%s1873_s19 + $0x170] sm:$0xff] }
  0x8c   : > { %v1007_v40 = vmul.f32 %v879_v32, %v495_v4  ;;  %v882_v41 = vmin.f32 %v754_v33, 6.0  ;;  %v757_v42 = vmax.f32 %v629_v34, 0.0  ;;  %v1008_v46 = vmul.f32 %v880_v36, %v496_v10  ;;  %v381_v13 = vld [vmem:[%s1881_s29 + $0x170] sm:$0xff]  ;;  %v254_v22 = vld [vmem:[%s1873_s19 + $0x178] sm:$0xff] }
  0x8d   : > { %v1009_v47 = vmul.f32 %v881_v37, %v497_v11  ;;  %v883_v48 = vmin.f32 %v755_v38, 6.0  ;;  %v884_v49 = vmin.f32 %v756_v39, 6.0  ;;  %v758_v56 = vmax.f32 %v630_v43, 0.0  ;;  %v382_v23 = vld [vmem:[%s1881_s29 + $0x178] sm:$0xff] }
  0x8e   : > { %v1135_v53 = vmul.f32 0.16666667, %v1007_v40  ;;  %v1010_v54 = vmul.f32 %v882_v41, %v498_v17  ;;  %v885_v55 = vmin.f32 %v757_v42, 6.0  ;;  %v1136_v59 = vmul.f32 0.16666667, %v1008_v46 }
  0x8f   : > { %v1137_v60 = vmul.f32 0.16666667, %v1009_v47  ;;  %v1011_v61 = vmul.f32 %v883_v48, %v499_v20  ;;  %v1012_v62 = vmul.f32 %v884_v49, %v500_v21  ;;  %v886_v3 = vmin.f32 %v758_v56, 6.0 }
  0x90   : > { %1263 = vst [vmem:[%s1913_s20 + $0x100] sm:$0xff] %v1135_v53  ;;  %v1138_v1 = vmul.f32 0.16666667, %v1010_v54  ;;  %v1013_v2 = vmul.f32 %v885_v55, %v501_v27  ;;  %v503_v4 = vadd.f32 %v375_v45, %v247_v44  ;;  %1264 = vst [vmem:[%s1913_s20 + $0x108] sm:$0xff] %v1136_v59  ;;  %v504_v10 = vadd.f32 %v376_v51, %v248_v50  ;;  %v255_v44 = vld [vmem:[%s1873_s19 + $0x180] sm:$0xff]  ;;  %v256_v50 = vld [vmem:[%s1873_s19 + $0x188] sm:$0xff] }
  0x91   : > { %1265 = vst [vmem:[%s1913_s20 + $0x110] sm:$0xff] %v1137_v60  ;;  %v1139_v8 = vmul.f32 0.16666667, %v1011_v61  ;;  %v1140_v9 = vmul.f32 0.16666667, %v1012_v62  ;;  %v505_v11 = vadd.f32 %v377_v57, %v249_v52  ;;  %v1014_v15 = vmul.f32 %v886_v3, %v502_v35  ;;  %v383_v45 = vld [vmem:[%s1881_s29 + $0x180] sm:$0xff] }
  0x92   : > { %1266 = vst [vmem:[%s1913_s20 + $0x118] sm:$0xff] %v1138_v1  ;;  %v1141_v14 = vmul.f32 0.16666667, %v1013_v2  ;;  %v631_v16 = vadd.f32 3.0, %v503_v4  ;;  %v506_v17 = vadd.f32 %v378_v63, %v250_v58  ;;  %v632_v18 = vadd.f32 3.0, %v504_v10  ;;  %v384_v51 = vld [vmem:[%s1881_s29 + $0x188] sm:$0xff] }
  0x93   : > { %1267 = vst [vmem:[%s1913_s20 + $0x120] sm:$0xff] %v1139_v8  ;;  %1268 = vst [vmem:[%s1913_s20 + $0x128] sm:$0xff] %v1140_v9  ;;  %v633_v19 = vadd.f32 3.0, %v505_v11  ;;  %v507_v20 = vadd.f32 %v379_v5, %v251_v0  ;;  %v508_v21 = vadd.f32 %v380_v7, %v252_v6  ;;  %v1142_v24 = vmul.f32 0.16666667, %v1014_v15  ;;  %v257_v52 = vld [vmem:[%s1873_s19 + $0x190] sm:$0xff] }
  0x94   : > { %1269 = vst [vmem:[%s1913_s20 + $0x130] sm:$0xff] %v1141_v14  ;;  %v759_v25 = vmax.f32 %v631_v16, 0.0  ;;  %v634_v26 = vadd.f32 3.0, %v506_v17  ;;  %v509_v27 = vadd.f32 %v381_v13, %v253_v12  ;;  %v760_v28 = vmax.f32 %v632_v18, 0.0  ;;  %v385_v57 = vld [vmem:[%s1881_s29 + $0x190] sm:$0xff]  ;;  %v258_v58 = vld [vmem:[%s1873_s19 + $0x198] sm:$0xff] }
  0x95   : > { %v761_v29 = vmax.f32 %v633_v19, 0.0  ;;  %v635_v30 = vadd.f32 3.0, %v507_v20  ;;  %v636_v31 = vadd.f32 3.0, %v508_v21  ;;  %1270 = vst [vmem:[%s1913_s20 + $0x138] sm:$0xff] %v1142_v24  ;;  %v510_v35 = vadd.f32 %v382_v23, %v254_v22  ;;  %v386_v63 = vld [vmem:[%s1881_s29 + $0x198] sm:$0xff]  ;;  %v259_v0 = vld [vmem:[%s1873_s19 + $0x1a0] sm:$0xff] }
  0x96   : > { %v887_v32 = vmin.f32 %v759_v25, 6.0  ;;  %v762_v33 = vmax.f32 %v634_v26, 0.0  ;;  %v637_v34 = vadd.f32 3.0, %v509_v27  ;;  %v888_v36 = vmin.f32 %v760_v28, 6.0  ;;  %v387_v5 = vld [vmem:[%s1881_s29 + $0x1a0] sm:$0xff]  ;;  %v260_v6 = vld [vmem:[%s1873_s19 + $0x1a8] sm:$0xff] }
  0x97   : > { %v889_v37 = vmin.f32 %v761_v29, 6.0  ;;  %v763_v38 = vmax.f32 %v635_v30, 0.0  ;;  %v764_v39 = vmax.f32 %v636_v31, 0.0  ;;  %v638_v43 = vadd.f32 3.0, %v510_v35  ;;  %v388_v7 = vld [vmem:[%s1881_s29 + $0x1a8] sm:$0xff]  ;;  %v261_v12 = vld [vmem:[%s1873_s19 + $0x1b0] sm:$0xff] }
  0x98   : > { %v1015_v40 = vmul.f32 %v887_v32, %v503_v4  ;;  %v890_v41 = vmin.f32 %v762_v33, 6.0  ;;  %v765_v42 = vmax.f32 %v637_v34, 0.0  ;;  %v1016_v46 = vmul.f32 %v888_v36, %v504_v10  ;;  %v389_v13 = vld [vmem:[%s1881_s29 + $0x1b0] sm:$0xff]  ;;  %v262_v22 = vld [vmem:[%s1873_s19 + $0x1b8] sm:$0xff] }
  0x99   : > { %v1017_v47 = vmul.f32 %v889_v37, %v505_v11  ;;  %v891_v48 = vmin.f32 %v763_v38, 6.0  ;;  %v892_v49 = vmin.f32 %v764_v39, 6.0  ;;  %v766_v56 = vmax.f32 %v638_v43, 0.0  ;;  %v390_v23 = vld [vmem:[%s1881_s29 + $0x1b8] sm:$0xff] }
  0x9a   : > { %v1143_v53 = vmul.f32 0.16666667, %v1015_v40  ;;  %v1018_v54 = vmul.f32 %v890_v41, %v506_v17  ;;  %v893_v55 = vmin.f32 %v765_v42, 6.0  ;;  %v1144_v59 = vmul.f32 0.16666667, %v1016_v46 }
  0x9b   : > { %v1145_v60 = vmul.f32 0.16666667, %v1017_v47  ;;  %v1019_v61 = vmul.f32 %v891_v48, %v507_v20  ;;  %v1020_v62 = vmul.f32 %v892_v49, %v508_v21  ;;  %v894_v3 = vmin.f32 %v766_v56, 6.0 }
  0x9c   : > { %1271 = vst [vmem:[%s1913_s20 + $0x140] sm:$0xff] %v1143_v53  ;;  %v1146_v1 = vmul.f32 0.16666667, %v1018_v54  ;;  %v1021_v2 = vmul.f32 %v893_v55, %v509_v27  ;;  %v511_v4 = vadd.f32 %v383_v45, %v255_v44  ;;  %1272 = vst [vmem:[%s1913_s20 + $0x148] sm:$0xff] %v1144_v59  ;;  %v512_v10 = vadd.f32 %v384_v51, %v256_v50  ;;  %v263_v44 = vld [vmem:[%s1873_s19 + $0x1c0] sm:$0xff]  ;;  %v264_v50 = vld [vmem:[%s1873_s19 + $0x1c8] sm:$0xff] }
  0x9d   : > { %1273 = vst [vmem:[%s1913_s20 + $0x150] sm:$0xff] %v1145_v60  ;;  %v1147_v8 = vmul.f32 0.16666667, %v1019_v61  ;;  %v1148_v9 = vmul.f32 0.16666667, %v1020_v62  ;;  %v513_v11 = vadd.f32 %v385_v57, %v257_v52  ;;  %v1022_v15 = vmul.f32 %v894_v3, %v510_v35  ;;  %v391_v45 = vld [vmem:[%s1881_s29 + $0x1c0] sm:$0xff] }
  0x9e   : > { %1274 = vst [vmem:[%s1913_s20 + $0x158] sm:$0xff] %v1146_v1  ;;  %v1149_v14 = vmul.f32 0.16666667, %v1021_v2  ;;  %v639_v16 = vadd.f32 3.0, %v511_v4  ;;  %v514_v17 = vadd.f32 %v386_v63, %v258_v58  ;;  %v640_v18 = vadd.f32 3.0, %v512_v10  ;;  %v392_v51 = vld [vmem:[%s1881_s29 + $0x1c8] sm:$0xff] }
  0x9f   : > { %1275 = vst [vmem:[%s1913_s20 + $0x160] sm:$0xff] %v1147_v8  ;;  %1276 = vst [vmem:[%s1913_s20 + $0x168] sm:$0xff] %v1148_v9  ;;  %v641_v19 = vadd.f32 3.0, %v513_v11  ;;  %v515_v20 = vadd.f32 %v387_v5, %v259_v0  ;;  %v516_v21 = vadd.f32 %v388_v7, %v260_v6  ;;  %v1150_v24 = vmul.f32 0.16666667, %v1022_v15  ;;  %v265_v52 = vld [vmem:[%s1873_s19 + $0x1d0] sm:$0xff] }
  0xa0   : > { %1277 = vst [vmem:[%s1913_s20 + $0x170] sm:$0xff] %v1149_v14  ;;  %v767_v25 = vmax.f32 %v639_v16, 0.0  ;;  %v642_v26 = vadd.f32 3.0, %v514_v17  ;;  %v517_v27 = vadd.f32 %v389_v13, %v261_v12  ;;  %v768_v28 = vmax.f32 %v640_v18, 0.0  ;;  %v393_v57 = vld [vmem:[%s1881_s29 + $0x1d0] sm:$0xff]  ;;  %v266_v58 = vld [vmem:[%s1873_s19 + $0x1d8] sm:$0xff] }
  0xa1   : > { %v769_v29 = vmax.f32 %v641_v19, 0.0  ;;  %v643_v30 = vadd.f32 3.0, %v515_v20  ;;  %v644_v31 = vadd.f32 3.0, %v516_v21  ;;  %1278 = vst [vmem:[%s1913_s20 + $0x178] sm:$0xff] %v1150_v24  ;;  %v518_v35 = vadd.f32 %v390_v23, %v262_v22  ;;  %v394_v63 = vld [vmem:[%s1881_s29 + $0x1d8] sm:$0xff]  ;;  %v267_v0 = vld [vmem:[%s1873_s19 + $0x1e0] sm:$0xff] }
  0xa2   : > { %v895_v32 = vmin.f32 %v767_v25, 6.0  ;;  %v770_v33 = vmax.f32 %v642_v26, 0.0  ;;  %v645_v34 = vadd.f32 3.0, %v517_v27  ;;  %v896_v36 = vmin.f32 %v768_v28, 6.0  ;;  %v395_v5 = vld [vmem:[%s1881_s29 + $0x1e0] sm:$0xff]  ;;  %v268_v6 = vld [vmem:[%s1873_s19 + $0x1e8] sm:$0xff] }
  0xa3   : > { %v897_v37 = vmin.f32 %v769_v29, 6.0  ;;  %v771_v38 = vmax.f32 %v643_v30, 0.0  ;;  %v772_v39 = vmax.f32 %v644_v31, 0.0  ;;  %v646_v43 = vadd.f32 3.0, %v518_v35  ;;  %v396_v7 = vld [vmem:[%s1881_s29 + $0x1e8] sm:$0xff]  ;;  %v269_v12 = vld [vmem:[%s1873_s19 + $0x1f0] sm:$0xff] }
  0xa4   : > { %v1023_v40 = vmul.f32 %v895_v32, %v511_v4  ;;  %v898_v41 = vmin.f32 %v770_v33, 6.0  ;;  %v773_v42 = vmax.f32 %v645_v34, 0.0  ;;  %v1024_v46 = vmul.f32 %v896_v36, %v512_v10  ;;  %v397_v13 = vld [vmem:[%s1881_s29 + $0x1f0] sm:$0xff]  ;;  %v270_v22 = vld [vmem:[%s1873_s19 + $0x1f8] sm:$0xff] }
  0xa5   : > { %v1025_v47 = vmul.f32 %v897_v37, %v513_v11  ;;  %v899_v48 = vmin.f32 %v771_v38, 6.0  ;;  %v900_v49 = vmin.f32 %v772_v39, 6.0  ;;  %v774_v56 = vmax.f32 %v646_v43, 0.0  ;;  %v398_v23 = vld [vmem:[%s1881_s29 + $0x1f8] sm:$0xff] }
  0xa6   : > { %v1151_v53 = vmul.f32 0.16666667, %v1023_v40  ;;  %v1026_v54 = vmul.f32 %v898_v41, %v514_v17  ;;  %v901_v55 = vmin.f32 %v773_v42, 6.0  ;;  %v1152_v59 = vmul.f32 0.16666667, %v1024_v46 }
  0xa7   : > { %v1153_v60 = vmul.f32 0.16666667, %v1025_v47  ;;  %v1027_v61 = vmul.f32 %v899_v48, %v515_v20  ;;  %v1028_v62 = vmul.f32 %v900_v49, %v516_v21  ;;  %v902_v3 = vmin.f32 %v774_v56, 6.0 }
  0xa8   : > { %1279 = vst [vmem:[%s1913_s20 + $0x180] sm:$0xff] %v1151_v53  ;;  %v1154_v1 = vmul.f32 0.16666667, %v1026_v54  ;;  %v1029_v2 = vmul.f32 %v901_v55, %v517_v27  ;;  %v519_v4 = vadd.f32 %v391_v45, %v263_v44  ;;  %1280 = vst [vmem:[%s1913_s20 + $0x188] sm:$0xff] %v1152_v59  ;;  %v520_v10 = vadd.f32 %v392_v51, %v264_v50  ;;  %v271_v44 = vld [vmem:[%s1873_s19 + $0x200] sm:$0xff]  ;;  %v272_v50 = vld [vmem:[%s1873_s19 + $0x208] sm:$0xff] }
  0xa9   : > { %1281 = vst [vmem:[%s1913_s20 + $0x190] sm:$0xff] %v1153_v60  ;;  %v1155_v8 = vmul.f32 0.16666667, %v1027_v61  ;;  %v1156_v9 = vmul.f32 0.16666667, %v1028_v62  ;;  %v521_v11 = vadd.f32 %v393_v57, %v265_v52  ;;  %v1030_v15 = vmul.f32 %v902_v3, %v518_v35  ;;  %v399_v45 = vld [vmem:[%s1881_s29 + $0x200] sm:$0xff] }
  0xaa   : > { %1282 = vst [vmem:[%s1913_s20 + $0x198] sm:$0xff] %v1154_v1  ;;  %v1157_v14 = vmul.f32 0.16666667, %v1029_v2  ;;  %v647_v16 = vadd.f32 3.0, %v519_v4  ;;  %v522_v17 = vadd.f32 %v394_v63, %v266_v58  ;;  %v648_v18 = vadd.f32 3.0, %v520_v10  ;;  %v400_v51 = vld [vmem:[%s1881_s29 + $0x208] sm:$0xff] }
  0xab   : > { %1283 = vst [vmem:[%s1913_s20 + $0x1a0] sm:$0xff] %v1155_v8  ;;  %1284 = vst [vmem:[%s1913_s20 + $0x1a8] sm:$0xff] %v1156_v9  ;;  %v649_v19 = vadd.f32 3.0, %v521_v11  ;;  %v523_v20 = vadd.f32 %v395_v5, %v267_v0  ;;  %v524_v21 = vadd.f32 %v396_v7, %v268_v6  ;;  %v1158_v24 = vmul.f32 0.16666667, %v1030_v15  ;;  %v273_v52 = vld [vmem:[%s1873_s19 + $0x210] sm:$0xff] }
  0xac   : > { %1285 = vst [vmem:[%s1913_s20 + $0x1b0] sm:$0xff] %v1157_v14  ;;  %v775_v25 = vmax.f32 %v647_v16, 0.0  ;;  %v650_v26 = vadd.f32 3.0, %v522_v17  ;;  %v525_v27 = vadd.f32 %v397_v13, %v269_v12  ;;  %v776_v28 = vmax.f32 %v648_v18, 0.0  ;;  %v401_v57 = vld [vmem:[%s1881_s29 + $0x210] sm:$0xff]  ;;  %v274_v58 = vld [vmem:[%s1873_s19 + $0x218] sm:$0xff] }
  0xad   : > { %v777_v29 = vmax.f32 %v649_v19, 0.0  ;;  %v651_v30 = vadd.f32 3.0, %v523_v20  ;;  %v652_v31 = vadd.f32 3.0, %v524_v21  ;;  %1286 = vst [vmem:[%s1913_s20 + $0x1b8] sm:$0xff] %v1158_v24  ;;  %v526_v35 = vadd.f32 %v398_v23, %v270_v22  ;;  %v402_v63 = vld [vmem:[%s1881_s29 + $0x218] sm:$0xff]  ;;  %v275_v0 = vld [vmem:[%s1873_s19 + $0x220] sm:$0xff] }
  0xae   : > { %v903_v32 = vmin.f32 %v775_v25, 6.0  ;;  %v778_v33 = vmax.f32 %v650_v26, 0.0  ;;  %v653_v34 = vadd.f32 3.0, %v525_v27  ;;  %v904_v36 = vmin.f32 %v776_v28, 6.0  ;;  %v403_v5 = vld [vmem:[%s1881_s29 + $0x220] sm:$0xff]  ;;  %v276_v6 = vld [vmem:[%s1873_s19 + $0x228] sm:$0xff] }
  0xaf   : > { %v905_v37 = vmin.f32 %v777_v29, 6.0  ;;  %v779_v38 = vmax.f32 %v651_v30, 0.0  ;;  %v780_v39 = vmax.f32 %v652_v31, 0.0  ;;  %v654_v43 = vadd.f32 3.0, %v526_v35  ;;  %v404_v7 = vld [vmem:[%s1881_s29 + $0x228] sm:$0xff]  ;;  %v277_v12 = vld [vmem:[%s1873_s19 + $0x230] sm:$0xff] }
  0xb0   : > { %v1031_v40 = vmul.f32 %v903_v32, %v519_v4  ;;  %v906_v41 = vmin.f32 %v778_v33, 6.0  ;;  %v781_v42 = vmax.f32 %v653_v34, 0.0  ;;  %v1032_v46 = vmul.f32 %v904_v36, %v520_v10  ;;  %v405_v13 = vld [vmem:[%s1881_s29 + $0x230] sm:$0xff]  ;;  %v278_v22 = vld [vmem:[%s1873_s19 + $0x238] sm:$0xff] }
  0xb1   : > { %v1033_v47 = vmul.f32 %v905_v37, %v521_v11  ;;  %v907_v48 = vmin.f32 %v779_v38, 6.0  ;;  %v908_v49 = vmin.f32 %v780_v39, 6.0  ;;  %v782_v56 = vmax.f32 %v654_v43, 0.0  ;;  %v406_v23 = vld [vmem:[%s1881_s29 + $0x238] sm:$0xff] }
  0xb2   : > { %v1159_v53 = vmul.f32 0.16666667, %v1031_v40  ;;  %v1034_v54 = vmul.f32 %v906_v41, %v522_v17  ;;  %v909_v55 = vmin.f32 %v781_v42, 6.0  ;;  %v1160_v59 = vmul.f32 0.16666667, %v1032_v46 }
  0xb3   : > { %v1161_v60 = vmul.f32 0.16666667, %v1033_v47  ;;  %v1035_v61 = vmul.f32 %v907_v48, %v523_v20  ;;  %v1036_v62 = vmul.f32 %v908_v49, %v524_v21  ;;  %v910_v3 = vmin.f32 %v782_v56, 6.0 }
  0xb4   : > { %1287 = vst [vmem:[%s1913_s20 + $0x1c0] sm:$0xff] %v1159_v53  ;;  %v1162_v1 = vmul.f32 0.16666667, %v1034_v54  ;;  %v1037_v2 = vmul.f32 %v909_v55, %v525_v27  ;;  %v527_v4 = vadd.f32 %v399_v45, %v271_v44  ;;  %1288 = vst [vmem:[%s1913_s20 + $0x1c8] sm:$0xff] %v1160_v59  ;;  %v528_v10 = vadd.f32 %v400_v51, %v272_v50  ;;  %v279_v44 = vld [vmem:[%s1873_s19 + $0x240] sm:$0xff]  ;;  %v280_v50 = vld [vmem:[%s1873_s19 + $0x248] sm:$0xff] }
  0xb5   : > { %1289 = vst [vmem:[%s1913_s20 + $0x1d0] sm:$0xff] %v1161_v60  ;;  %v1163_v8 = vmul.f32 0.16666667, %v1035_v61  ;;  %v1164_v9 = vmul.f32 0.16666667, %v1036_v62  ;;  %v529_v11 = vadd.f32 %v401_v57, %v273_v52  ;;  %v1038_v15 = vmul.f32 %v910_v3, %v526_v35  ;;  %v407_v45 = vld [vmem:[%s1881_s29 + $0x240] sm:$0xff] }
  0xb6   : > { %1290 = vst [vmem:[%s1913_s20 + $0x1d8] sm:$0xff] %v1162_v1  ;;  %v1165_v14 = vmul.f32 0.16666667, %v1037_v2  ;;  %v655_v16 = vadd.f32 3.0, %v527_v4  ;;  %v530_v17 = vadd.f32 %v402_v63, %v274_v58  ;;  %v656_v18 = vadd.f32 3.0, %v528_v10  ;;  %v408_v51 = vld [vmem:[%s1881_s29 + $0x248] sm:$0xff] }
  0xb7   : > { %1291 = vst [vmem:[%s1913_s20 + $0x1e0] sm:$0xff] %v1163_v8  ;;  %1292 = vst [vmem:[%s1913_s20 + $0x1e8] sm:$0xff] %v1164_v9  ;;  %v657_v19 = vadd.f32 3.0, %v529_v11  ;;  %v531_v20 = vadd.f32 %v403_v5, %v275_v0  ;;  %v532_v21 = vadd.f32 %v404_v7, %v276_v6  ;;  %v1166_v24 = vmul.f32 0.16666667, %v1038_v15  ;;  %v281_v52 = vld [vmem:[%s1873_s19 + $0x250] sm:$0xff] }
  0xb8   : > { %1293 = vst [vmem:[%s1913_s20 + $0x1f0] sm:$0xff] %v1165_v14  ;;  %v783_v25 = vmax.f32 %v655_v16, 0.0  ;;  %v658_v26 = vadd.f32 3.0, %v530_v17  ;;  %v533_v27 = vadd.f32 %v405_v13, %v277_v12  ;;  %v784_v28 = vmax.f32 %v656_v18, 0.0  ;;  %v409_v57 = vld [vmem:[%s1881_s29 + $0x250] sm:$0xff]  ;;  %v282_v58 = vld [vmem:[%s1873_s19 + $0x258] sm:$0xff] }
  0xb9   : > { %v785_v29 = vmax.f32 %v657_v19, 0.0  ;;  %v659_v30 = vadd.f32 3.0, %v531_v20  ;;  %v660_v31 = vadd.f32 3.0, %v532_v21  ;;  %1294 = vst [vmem:[%s1913_s20 + $0x1f8] sm:$0xff] %v1166_v24  ;;  %v534_v35 = vadd.f32 %v406_v23, %v278_v22  ;;  %v410_v63 = vld [vmem:[%s1881_s29 + $0x258] sm:$0xff]  ;;  %v283_v0 = vld [vmem:[%s1873_s19 + $0x260] sm:$0xff] }
  0xba   : > { %v911_v32 = vmin.f32 %v783_v25, 6.0  ;;  %v786_v33 = vmax.f32 %v658_v26, 0.0  ;;  %v661_v34 = vadd.f32 3.0, %v533_v27  ;;  %v912_v36 = vmin.f32 %v784_v28, 6.0  ;;  %v411_v5 = vld [vmem:[%s1881_s29 + $0x260] sm:$0xff]  ;;  %v284_v6 = vld [vmem:[%s1873_s19 + $0x268] sm:$0xff] }
  0xbb   : > { %v913_v37 = vmin.f32 %v785_v29, 6.0  ;;  %v787_v38 = vmax.f32 %v659_v30, 0.0  ;;  %v788_v39 = vmax.f32 %v660_v31, 0.0  ;;  %v662_v43 = vadd.f32 3.0, %v534_v35  ;;  %v412_v7 = vld [vmem:[%s1881_s29 + $0x268] sm:$0xff]  ;;  %v285_v12 = vld [vmem:[%s1873_s19 + $0x270] sm:$0xff] }
  0xbc   : > { %v1039_v40 = vmul.f32 %v911_v32, %v527_v4  ;;  %v914_v41 = vmin.f32 %v786_v33, 6.0  ;;  %v789_v42 = vmax.f32 %v661_v34, 0.0  ;;  %v1040_v46 = vmul.f32 %v912_v36, %v528_v10  ;;  %v413_v13 = vld [vmem:[%s1881_s29 + $0x270] sm:$0xff]  ;;  %v286_v22 = vld [vmem:[%s1873_s19 + $0x278] sm:$0xff] }
  0xbd   : > { %v1041_v47 = vmul.f32 %v913_v37, %v529_v11  ;;  %v915_v48 = vmin.f32 %v787_v38, 6.0  ;;  %v916_v49 = vmin.f32 %v788_v39, 6.0  ;;  %v790_v56 = vmax.f32 %v662_v43, 0.0  ;;  %v414_v23 = vld [vmem:[%s1881_s29 + $0x278] sm:$0xff] }
  0xbe   : > { %v1167_v53 = vmul.f32 0.16666667, %v1039_v40  ;;  %v1042_v54 = vmul.f32 %v914_v41, %v530_v17  ;;  %v917_v55 = vmin.f32 %v789_v42, 6.0  ;;  %v1168_v59 = vmul.f32 0.16666667, %v1040_v46 }
  0xbf   : > { %v1169_v60 = vmul.f32 0.16666667, %v1041_v47  ;;  %v1043_v61 = vmul.f32 %v915_v48, %v531_v20  ;;  %v1044_v62 = vmul.f32 %v916_v49, %v532_v21  ;;  %v918_v3 = vmin.f32 %v790_v56, 6.0 }
  0xc0   : > { %1295 = vst [vmem:[%s1913_s20 + $0x200] sm:$0xff] %v1167_v53  ;;  %v1170_v1 = vmul.f32 0.16666667, %v1042_v54  ;;  %v1045_v2 = vmul.f32 %v917_v55, %v533_v27  ;;  %v535_v4 = vadd.f32 %v407_v45, %v279_v44  ;;  %1296 = vst [vmem:[%s1913_s20 + $0x208] sm:$0xff] %v1168_v59  ;;  %v536_v10 = vadd.f32 %v408_v51, %v280_v50  ;;  %v287_v44 = vld [vmem:[%s1873_s19 + $0x280] sm:$0xff]  ;;  %v288_v50 = vld [vmem:[%s1873_s19 + $0x288] sm:$0xff] }
  0xc1   : > { %1297 = vst [vmem:[%s1913_s20 + $0x210] sm:$0xff] %v1169_v60  ;;  %v1171_v8 = vmul.f32 0.16666667, %v1043_v61  ;;  %v1172_v9 = vmul.f32 0.16666667, %v1044_v62  ;;  %v537_v11 = vadd.f32 %v409_v57, %v281_v52  ;;  %v1046_v15 = vmul.f32 %v918_v3, %v534_v35  ;;  %v415_v45 = vld [vmem:[%s1881_s29 + $0x280] sm:$0xff] }
  0xc2   : > { %1298 = vst [vmem:[%s1913_s20 + $0x218] sm:$0xff] %v1170_v1  ;;  %v1173_v14 = vmul.f32 0.16666667, %v1045_v2  ;;  %v663_v16 = vadd.f32 3.0, %v535_v4  ;;  %v538_v17 = vadd.f32 %v410_v63, %v282_v58  ;;  %v664_v18 = vadd.f32 3.0, %v536_v10  ;;  %v416_v51 = vld [vmem:[%s1881_s29 + $0x288] sm:$0xff] }
  0xc3   : > { %1299 = vst [vmem:[%s1913_s20 + $0x220] sm:$0xff] %v1171_v8  ;;  %1300 = vst [vmem:[%s1913_s20 + $0x228] sm:$0xff] %v1172_v9  ;;  %v665_v19 = vadd.f32 3.0, %v537_v11  ;;  %v539_v20 = vadd.f32 %v411_v5, %v283_v0  ;;  %v540_v21 = vadd.f32 %v412_v7, %v284_v6  ;;  %v1174_v24 = vmul.f32 0.16666667, %v1046_v15  ;;  %v289_v52 = vld [vmem:[%s1873_s19 + $0x290] sm:$0xff] }
  0xc4   : > { %1301 = vst [vmem:[%s1913_s20 + $0x230] sm:$0xff] %v1173_v14  ;;  %v791_v25 = vmax.f32 %v663_v16, 0.0  ;;  %v666_v26 = vadd.f32 3.0, %v538_v17  ;;  %v541_v27 = vadd.f32 %v413_v13, %v285_v12  ;;  %v792_v28 = vmax.f32 %v664_v18, 0.0  ;;  %v417_v57 = vld [vmem:[%s1881_s29 + $0x290] sm:$0xff]  ;;  %v290_v58 = vld [vmem:[%s1873_s19 + $0x298] sm:$0xff] }
  0xc5   : > { %v793_v29 = vmax.f32 %v665_v19, 0.0  ;;  %v667_v30 = vadd.f32 3.0, %v539_v20  ;;  %v668_v31 = vadd.f32 3.0, %v540_v21  ;;  %1302 = vst [vmem:[%s1913_s20 + $0x238] sm:$0xff] %v1174_v24  ;;  %v542_v35 = vadd.f32 %v414_v23, %v286_v22  ;;  %v418_v63 = vld [vmem:[%s1881_s29 + $0x298] sm:$0xff]  ;;  %v291_v0 = vld [vmem:[%s1873_s19 + $0x2a0] sm:$0xff] }
  0xc6   : > { %v919_v32 = vmin.f32 %v791_v25, 6.0  ;;  %v794_v33 = vmax.f32 %v666_v26, 0.0  ;;  %v669_v34 = vadd.f32 3.0, %v541_v27  ;;  %v920_v36 = vmin.f32 %v792_v28, 6.0  ;;  %v419_v5 = vld [vmem:[%s1881_s29 + $0x2a0] sm:$0xff]  ;;  %v292_v6 = vld [vmem:[%s1873_s19 + $0x2a8] sm:$0xff] }
  0xc7   : > { %v921_v37 = vmin.f32 %v793_v29, 6.0  ;;  %v795_v38 = vmax.f32 %v667_v30, 0.0  ;;  %v796_v39 = vmax.f32 %v668_v31, 0.0  ;;  %v670_v43 = vadd.f32 3.0, %v542_v35  ;;  %v420_v7 = vld [vmem:[%s1881_s29 + $0x2a8] sm:$0xff]  ;;  %v293_v12 = vld [vmem:[%s1873_s19 + $0x2b0] sm:$0xff] }
  0xc8   : > { %v1047_v40 = vmul.f32 %v919_v32, %v535_v4  ;;  %v922_v41 = vmin.f32 %v794_v33, 6.0  ;;  %v797_v42 = vmax.f32 %v669_v34, 0.0  ;;  %v1048_v46 = vmul.f32 %v920_v36, %v536_v10  ;;  %v421_v13 = vld [vmem:[%s1881_s29 + $0x2b0] sm:$0xff]  ;;  %v294_v22 = vld [vmem:[%s1873_s19 + $0x2b8] sm:$0xff] }
  0xc9   : > { %v1049_v47 = vmul.f32 %v921_v37, %v537_v11  ;;  %v923_v48 = vmin.f32 %v795_v38, 6.0  ;;  %v924_v49 = vmin.f32 %v796_v39, 6.0  ;;  %v798_v56 = vmax.f32 %v670_v43, 0.0  ;;  %v422_v23 = vld [vmem:[%s1881_s29 + $0x2b8] sm:$0xff] }
  0xca   : > { %v1175_v53 = vmul.f32 0.16666667, %v1047_v40  ;;  %v1050_v54 = vmul.f32 %v922_v41, %v538_v17  ;;  %v925_v55 = vmin.f32 %v797_v42, 6.0  ;;  %v1176_v59 = vmul.f32 0.16666667, %v1048_v46 }
  0xcb   : > { %v1177_v60 = vmul.f32 0.16666667, %v1049_v47  ;;  %v1051_v61 = vmul.f32 %v923_v48, %v539_v20  ;;  %v1052_v62 = vmul.f32 %v924_v49, %v540_v21  ;;  %v926_v3 = vmin.f32 %v798_v56, 6.0 }
  0xcc   : > { %1303 = vst [vmem:[%s1913_s20 + $0x240] sm:$0xff] %v1175_v53  ;;  %v1178_v1 = vmul.f32 0.16666667, %v1050_v54  ;;  %v1053_v2 = vmul.f32 %v925_v55, %v541_v27  ;;  %v543_v4 = vadd.f32 %v415_v45, %v287_v44  ;;  %1304 = vst [vmem:[%s1913_s20 + $0x248] sm:$0xff] %v1176_v59  ;;  %v544_v10 = vadd.f32 %v416_v51, %v288_v50  ;;  %v295_v44 = vld [vmem:[%s1873_s19 + $0x2c0] sm:$0xff]  ;;  %v296_v50 = vld [vmem:[%s1873_s19 + $0x2c8] sm:$0xff] }
  0xcd   : > { %1305 = vst [vmem:[%s1913_s20 + $0x250] sm:$0xff] %v1177_v60  ;;  %v1179_v8 = vmul.f32 0.16666667, %v1051_v61  ;;  %v1180_v9 = vmul.f32 0.16666667, %v1052_v62  ;;  %v545_v11 = vadd.f32 %v417_v57, %v289_v52  ;;  %v1054_v15 = vmul.f32 %v926_v3, %v542_v35  ;;  %v423_v45 = vld [vmem:[%s1881_s29 + $0x2c0] sm:$0xff] }
  0xce   : > { %1306 = vst [vmem:[%s1913_s20 + $0x258] sm:$0xff] %v1178_v1  ;;  %v1181_v14 = vmul.f32 0.16666667, %v1053_v2  ;;  %v671_v16 = vadd.f32 3.0, %v543_v4  ;;  %v546_v17 = vadd.f32 %v418_v63, %v290_v58  ;;  %v672_v18 = vadd.f32 3.0, %v544_v10  ;;  %v424_v51 = vld [vmem:[%s1881_s29 + $0x2c8] sm:$0xff] }
  0xcf   : > { %1307 = vst [vmem:[%s1913_s20 + $0x260] sm:$0xff] %v1179_v8  ;;  %1308 = vst [vmem:[%s1913_s20 + $0x268] sm:$0xff] %v1180_v9  ;;  %v673_v19 = vadd.f32 3.0, %v545_v11  ;;  %v547_v20 = vadd.f32 %v419_v5, %v291_v0  ;;  %v548_v21 = vadd.f32 %v420_v7, %v292_v6  ;;  %v1182_v24 = vmul.f32 0.16666667, %v1054_v15  ;;  %v297_v52 = vld [vmem:[%s1873_s19 + $0x2d0] sm:$0xff] }
  0xd0   : > { %1309 = vst [vmem:[%s1913_s20 + $0x270] sm:$0xff] %v1181_v14  ;;  %v799_v25 = vmax.f32 %v671_v16, 0.0  ;;  %v674_v26 = vadd.f32 3.0, %v546_v17  ;;  %v549_v27 = vadd.f32 %v421_v13, %v293_v12  ;;  %v800_v28 = vmax.f32 %v672_v18, 0.0  ;;  %v425_v57 = vld [vmem:[%s1881_s29 + $0x2d0] sm:$0xff]  ;;  %v298_v58 = vld [vmem:[%s1873_s19 + $0x2d8] sm:$0xff] }
  0xd1   : > { %v801_v29 = vmax.f32 %v673_v19, 0.0  ;;  %v675_v30 = vadd.f32 3.0, %v547_v20  ;;  %v676_v31 = vadd.f32 3.0, %v548_v21  ;;  %1310 = vst [vmem:[%s1913_s20 + $0x278] sm:$0xff] %v1182_v24  ;;  %v550_v35 = vadd.f32 %v422_v23, %v294_v22  ;;  %v426_v63 = vld [vmem:[%s1881_s29 + $0x2d8] sm:$0xff]  ;;  %v299_v0 = vld [vmem:[%s1873_s19 + $0x2e0] sm:$0xff] }
  0xd2   : > { %v927_v32 = vmin.f32 %v799_v25, 6.0  ;;  %v802_v33 = vmax.f32 %v674_v26, 0.0  ;;  %v677_v34 = vadd.f32 3.0, %v549_v27  ;;  %v928_v36 = vmin.f32 %v800_v28, 6.0  ;;  %v427_v5 = vld [vmem:[%s1881_s29 + $0x2e0] sm:$0xff]  ;;  %v300_v6 = vld [vmem:[%s1873_s19 + $0x2e8] sm:$0xff] }
  0xd3   : > { %v929_v37 = vmin.f32 %v801_v29, 6.0  ;;  %v803_v38 = vmax.f32 %v675_v30, 0.0  ;;  %v804_v39 = vmax.f32 %v676_v31, 0.0  ;;  %v678_v43 = vadd.f32 3.0, %v550_v35  ;;  %v428_v7 = vld [vmem:[%s1881_s29 + $0x2e8] sm:$0xff]  ;;  %v301_v12 = vld [vmem:[%s1873_s19 + $0x2f0] sm:$0xff] }
  0xd4   : > { %v1055_v40 = vmul.f32 %v927_v32, %v543_v4  ;;  %v930_v41 = vmin.f32 %v802_v33, 6.0  ;;  %v805_v42 = vmax.f32 %v677_v34, 0.0  ;;  %v1056_v46 = vmul.f32 %v928_v36, %v544_v10  ;;  %v429_v13 = vld [vmem:[%s1881_s29 + $0x2f0] sm:$0xff]  ;;  %v302_v22 = vld [vmem:[%s1873_s19 + $0x2f8] sm:$0xff] }
  0xd5   : > { %v1057_v47 = vmul.f32 %v929_v37, %v545_v11  ;;  %v931_v48 = vmin.f32 %v803_v38, 6.0  ;;  %v932_v49 = vmin.f32 %v804_v39, 6.0  ;;  %v806_v56 = vmax.f32 %v678_v43, 0.0  ;;  %v430_v23 = vld [vmem:[%s1881_s29 + $0x2f8] sm:$0xff] }
  0xd6   : > { %v1183_v53 = vmul.f32 0.16666667, %v1055_v40  ;;  %v1058_v54 = vmul.f32 %v930_v41, %v546_v17  ;;  %v933_v55 = vmin.f32 %v805_v42, 6.0  ;;  %v1184_v59 = vmul.f32 0.16666667, %v1056_v46 }
  0xd7   : > { %v1185_v60 = vmul.f32 0.16666667, %v1057_v47  ;;  %v1059_v61 = vmul.f32 %v931_v48, %v547_v20  ;;  %v1060_v62 = vmul.f32 %v932_v49, %v548_v21  ;;  %v934_v3 = vmin.f32 %v806_v56, 6.0 }
  0xd8   : > { %1311 = vst [vmem:[%s1913_s20 + $0x280] sm:$0xff] %v1183_v53  ;;  %v1186_v1 = vmul.f32 0.16666667, %v1058_v54  ;;  %v1061_v2 = vmul.f32 %v933_v55, %v549_v27  ;;  %v551_v4 = vadd.f32 %v423_v45, %v295_v44  ;;  %1312 = vst [vmem:[%s1913_s20 + $0x288] sm:$0xff] %v1184_v59  ;;  %v552_v10 = vadd.f32 %v424_v51, %v296_v50  ;;  %v303_v44 = vld [vmem:[%s1873_s19 + $0x300] sm:$0xff]  ;;  %v304_v50 = vld [vmem:[%s1873_s19 + $0x308] sm:$0xff] }
  0xd9   : > { %1313 = vst [vmem:[%s1913_s20 + $0x290] sm:$0xff] %v1185_v60  ;;  %v1187_v8 = vmul.f32 0.16666667, %v1059_v61  ;;  %v1188_v9 = vmul.f32 0.16666667, %v1060_v62  ;;  %v553_v11 = vadd.f32 %v425_v57, %v297_v52  ;;  %v1062_v15 = vmul.f32 %v934_v3, %v550_v35  ;;  %v431_v45 = vld [vmem:[%s1881_s29 + $0x300] sm:$0xff] }
  0xda   : > { %1314 = vst [vmem:[%s1913_s20 + $0x298] sm:$0xff] %v1186_v1  ;;  %v1189_v14 = vmul.f32 0.16666667, %v1061_v2  ;;  %v679_v16 = vadd.f32 3.0, %v551_v4  ;;  %v554_v17 = vadd.f32 %v426_v63, %v298_v58  ;;  %v680_v18 = vadd.f32 3.0, %v552_v10  ;;  %v432_v51 = vld [vmem:[%s1881_s29 + $0x308] sm:$0xff] }
  0xdb   : > { %1315 = vst [vmem:[%s1913_s20 + $0x2a0] sm:$0xff] %v1187_v8  ;;  %1316 = vst [vmem:[%s1913_s20 + $0x2a8] sm:$0xff] %v1188_v9  ;;  %v681_v19 = vadd.f32 3.0, %v553_v11  ;;  %v555_v20 = vadd.f32 %v427_v5, %v299_v0  ;;  %v556_v21 = vadd.f32 %v428_v7, %v300_v6  ;;  %v1190_v24 = vmul.f32 0.16666667, %v1062_v15  ;;  %v305_v52 = vld [vmem:[%s1873_s19 + $0x310] sm:$0xff] }
  0xdc   : > { %1317 = vst [vmem:[%s1913_s20 + $0x2b0] sm:$0xff] %v1189_v14  ;;  %v807_v25 = vmax.f32 %v679_v16, 0.0  ;;  %v682_v26 = vadd.f32 3.0, %v554_v17  ;;  %v557_v27 = vadd.f32 %v429_v13, %v301_v12  ;;  %v808_v28 = vmax.f32 %v680_v18, 0.0  ;;  %v433_v57 = vld [vmem:[%s1881_s29 + $0x310] sm:$0xff]  ;;  %v306_v58 = vld [vmem:[%s1873_s19 + $0x318] sm:$0xff] }
  0xdd   : > { %v809_v29 = vmax.f32 %v681_v19, 0.0  ;;  %v683_v30 = vadd.f32 3.0, %v555_v20  ;;  %v684_v31 = vadd.f32 3.0, %v556_v21  ;;  %1318 = vst [vmem:[%s1913_s20 + $0x2b8] sm:$0xff] %v1190_v24  ;;  %v558_v35 = vadd.f32 %v430_v23, %v302_v22  ;;  %v434_v63 = vld [vmem:[%s1881_s29 + $0x318] sm:$0xff]  ;;  %v307_v0 = vld [vmem:[%s1873_s19 + $0x320] sm:$0xff] }
  0xde   : > { %v935_v32 = vmin.f32 %v807_v25, 6.0  ;;  %v810_v33 = vmax.f32 %v682_v26, 0.0  ;;  %v685_v34 = vadd.f32 3.0, %v557_v27  ;;  %v936_v36 = vmin.f32 %v808_v28, 6.0  ;;  %v435_v5 = vld [vmem:[%s1881_s29 + $0x320] sm:$0xff]  ;;  %v308_v6 = vld [vmem:[%s1873_s19 + $0x328] sm:$0xff] }
  0xdf   : > { %v937_v37 = vmin.f32 %v809_v29, 6.0  ;;  %v811_v38 = vmax.f32 %v683_v30, 0.0  ;;  %v812_v39 = vmax.f32 %v684_v31, 0.0  ;;  %v686_v43 = vadd.f32 3.0, %v558_v35  ;;  %v436_v7 = vld [vmem:[%s1881_s29 + $0x328] sm:$0xff]  ;;  %v309_v12 = vld [vmem:[%s1873_s19 + $0x330] sm:$0xff] }
  0xe0   : > { %v1063_v40 = vmul.f32 %v935_v32, %v551_v4  ;;  %v938_v41 = vmin.f32 %v810_v33, 6.0  ;;  %v813_v42 = vmax.f32 %v685_v34, 0.0  ;;  %v1064_v46 = vmul.f32 %v936_v36, %v552_v10  ;;  %v437_v13 = vld [vmem:[%s1881_s29 + $0x330] sm:$0xff]  ;;  %v310_v22 = vld [vmem:[%s1873_s19 + $0x338] sm:$0xff] }
  0xe1   : > { %v1065_v47 = vmul.f32 %v937_v37, %v553_v11  ;;  %v939_v48 = vmin.f32 %v811_v38, 6.0  ;;  %v940_v49 = vmin.f32 %v812_v39, 6.0  ;;  %v814_v56 = vmax.f32 %v686_v43, 0.0  ;;  %v438_v23 = vld [vmem:[%s1881_s29 + $0x338] sm:$0xff] }
  0xe2   : > { %v1191_v53 = vmul.f32 0.16666667, %v1063_v40  ;;  %v1066_v54 = vmul.f32 %v938_v41, %v554_v17  ;;  %v941_v55 = vmin.f32 %v813_v42, 6.0  ;;  %v1192_v59 = vmul.f32 0.16666667, %v1064_v46 }
  0xe3   : > { %v1193_v60 = vmul.f32 0.16666667, %v1065_v47  ;;  %v1067_v61 = vmul.f32 %v939_v48, %v555_v20  ;;  %v1068_v62 = vmul.f32 %v940_v49, %v556_v21  ;;  %v942_v3 = vmin.f32 %v814_v56, 6.0 }
  0xe4   : > { %1319 = vst [vmem:[%s1913_s20 + $0x2c0] sm:$0xff] %v1191_v53  ;;  %v1194_v1 = vmul.f32 0.16666667, %v1066_v54  ;;  %v1069_v2 = vmul.f32 %v941_v55, %v557_v27  ;;  %v559_v4 = vadd.f32 %v431_v45, %v303_v44  ;;  %1320 = vst [vmem:[%s1913_s20 + $0x2c8] sm:$0xff] %v1192_v59  ;;  %v560_v10 = vadd.f32 %v432_v51, %v304_v50  ;;  %v311_v44 = vld [vmem:[%s1873_s19 + $0x340] sm:$0xff]  ;;  %v312_v50 = vld [vmem:[%s1873_s19 + $0x348] sm:$0xff] }
  0xe5   : > { %1321 = vst [vmem:[%s1913_s20 + $0x2d0] sm:$0xff] %v1193_v60  ;;  %v1195_v8 = vmul.f32 0.16666667, %v1067_v61  ;;  %v1196_v9 = vmul.f32 0.16666667, %v1068_v62  ;;  %v561_v11 = vadd.f32 %v433_v57, %v305_v52  ;;  %v1070_v15 = vmul.f32 %v942_v3, %v558_v35  ;;  %v439_v45 = vld [vmem:[%s1881_s29 + $0x340] sm:$0xff] }
  0xe6   : > { %1322 = vst [vmem:[%s1913_s20 + $0x2d8] sm:$0xff] %v1194_v1  ;;  %v1197_v14 = vmul.f32 0.16666667, %v1069_v2  ;;  %v687_v16 = vadd.f32 3.0, %v559_v4  ;;  %v562_v17 = vadd.f32 %v434_v63, %v306_v58  ;;  %v688_v18 = vadd.f32 3.0, %v560_v10  ;;  %v440_v51 = vld [vmem:[%s1881_s29 + $0x348] sm:$0xff] }
  0xe7   : > { %1323 = vst [vmem:[%s1913_s20 + $0x2e0] sm:$0xff] %v1195_v8  ;;  %1324 = vst [vmem:[%s1913_s20 + $0x2e8] sm:$0xff] %v1196_v9  ;;  %v689_v19 = vadd.f32 3.0, %v561_v11  ;;  %v563_v20 = vadd.f32 %v435_v5, %v307_v0  ;;  %v564_v21 = vadd.f32 %v436_v7, %v308_v6  ;;  %v1198_v24 = vmul.f32 0.16666667, %v1070_v15  ;;  %v313_v52 = vld [vmem:[%s1873_s19 + $0x350] sm:$0xff] }
  0xe8   : > { %1325 = vst [vmem:[%s1913_s20 + $0x2f0] sm:$0xff] %v1197_v14  ;;  %v815_v25 = vmax.f32 %v687_v16, 0.0  ;;  %v690_v26 = vadd.f32 3.0, %v562_v17  ;;  %v565_v27 = vadd.f32 %v437_v13, %v309_v12  ;;  %v816_v28 = vmax.f32 %v688_v18, 0.0  ;;  %v441_v57 = vld [vmem:[%s1881_s29 + $0x350] sm:$0xff]  ;;  %v314_v58 = vld [vmem:[%s1873_s19 + $0x358] sm:$0xff] }
  0xe9   : > { %v817_v29 = vmax.f32 %v689_v19, 0.0  ;;  %v691_v30 = vadd.f32 3.0, %v563_v20  ;;  %v692_v31 = vadd.f32 3.0, %v564_v21  ;;  %1326 = vst [vmem:[%s1913_s20 + $0x2f8] sm:$0xff] %v1198_v24  ;;  %v566_v35 = vadd.f32 %v438_v23, %v310_v22  ;;  %v442_v63 = vld [vmem:[%s1881_s29 + $0x358] sm:$0xff]  ;;  %v315_v0 = vld [vmem:[%s1873_s19 + $0x360] sm:$0xff] }
  0xea   : > { %v943_v32 = vmin.f32 %v815_v25, 6.0  ;;  %v818_v33 = vmax.f32 %v690_v26, 0.0  ;;  %v693_v34 = vadd.f32 3.0, %v565_v27  ;;  %v944_v36 = vmin.f32 %v816_v28, 6.0  ;;  %v443_v5 = vld [vmem:[%s1881_s29 + $0x360] sm:$0xff]  ;;  %v316_v6 = vld [vmem:[%s1873_s19 + $0x368] sm:$0xff] }
  0xeb   : > { %v945_v37 = vmin.f32 %v817_v29, 6.0  ;;  %v819_v38 = vmax.f32 %v691_v30, 0.0  ;;  %v820_v39 = vmax.f32 %v692_v31, 0.0  ;;  %v694_v43 = vadd.f32 3.0, %v566_v35  ;;  %v444_v7 = vld [vmem:[%s1881_s29 + $0x368] sm:$0xff]  ;;  %v317_v12 = vld [vmem:[%s1873_s19 + $0x370] sm:$0xff] }
  0xec   : > { %v1071_v40 = vmul.f32 %v943_v32, %v559_v4  ;;  %v946_v41 = vmin.f32 %v818_v33, 6.0  ;;  %v821_v42 = vmax.f32 %v693_v34, 0.0  ;;  %v1072_v46 = vmul.f32 %v944_v36, %v560_v10  ;;  %v445_v13 = vld [vmem:[%s1881_s29 + $0x370] sm:$0xff]  ;;  %v318_v22 = vld [vmem:[%s1873_s19 + $0x378] sm:$0xff] }
  0xed   : > { %v1073_v47 = vmul.f32 %v945_v37, %v561_v11  ;;  %v947_v48 = vmin.f32 %v819_v38, 6.0  ;;  %v948_v49 = vmin.f32 %v820_v39, 6.0  ;;  %v822_v56 = vmax.f32 %v694_v43, 0.0  ;;  %v446_v23 = vld [vmem:[%s1881_s29 + $0x378] sm:$0xff] }
  0xee   : > { %v1199_v53 = vmul.f32 0.16666667, %v1071_v40  ;;  %v1074_v54 = vmul.f32 %v946_v41, %v562_v17  ;;  %v949_v55 = vmin.f32 %v821_v42, 6.0  ;;  %v1200_v59 = vmul.f32 0.16666667, %v1072_v46 }
  0xef   : > { %v1201_v60 = vmul.f32 0.16666667, %v1073_v47  ;;  %v1075_v61 = vmul.f32 %v947_v48, %v563_v20  ;;  %v1076_v62 = vmul.f32 %v948_v49, %v564_v21  ;;  %v950_v3 = vmin.f32 %v822_v56, 6.0 }
  0xf0   : > { %1327 = vst [vmem:[%s1913_s20 + $0x300] sm:$0xff] %v1199_v53  ;;  %v1202_v1 = vmul.f32 0.16666667, %v1074_v54  ;;  %v1077_v2 = vmul.f32 %v949_v55, %v565_v27  ;;  %v567_v4 = vadd.f32 %v439_v45, %v311_v44  ;;  %1328 = vst [vmem:[%s1913_s20 + $0x308] sm:$0xff] %v1200_v59  ;;  %v568_v10 = vadd.f32 %v440_v51, %v312_v50  ;;  %v319_v44 = vld [vmem:[%s1873_s19 + $0x380] sm:$0xff]  ;;  %v320_v50 = vld [vmem:[%s1873_s19 + $0x388] sm:$0xff] }
  0xf1   : > { %1329 = vst [vmem:[%s1913_s20 + $0x310] sm:$0xff] %v1201_v60  ;;  %v1203_v8 = vmul.f32 0.16666667, %v1075_v61  ;;  %v1204_v9 = vmul.f32 0.16666667, %v1076_v62  ;;  %v569_v11 = vadd.f32 %v441_v57, %v313_v52  ;;  %v1078_v15 = vmul.f32 %v950_v3, %v566_v35  ;;  %v447_v45 = vld [vmem:[%s1881_s29 + $0x380] sm:$0xff] }
  0xf2   : > { %1330 = vst [vmem:[%s1913_s20 + $0x318] sm:$0xff] %v1202_v1  ;;  %v1205_v14 = vmul.f32 0.16666667, %v1077_v2  ;;  %v695_v16 = vadd.f32 3.0, %v567_v4  ;;  %v570_v17 = vadd.f32 %v442_v63, %v314_v58  ;;  %v696_v18 = vadd.f32 3.0, %v568_v10  ;;  %v448_v51 = vld [vmem:[%s1881_s29 + $0x388] sm:$0xff] }
  0xf3   : > { %1331 = vst [vmem:[%s1913_s20 + $0x320] sm:$0xff] %v1203_v8  ;;  %1332 = vst [vmem:[%s1913_s20 + $0x328] sm:$0xff] %v1204_v9  ;;  %v697_v19 = vadd.f32 3.0, %v569_v11  ;;  %v571_v20 = vadd.f32 %v443_v5, %v315_v0  ;;  %v572_v21 = vadd.f32 %v444_v7, %v316_v6  ;;  %v1206_v24 = vmul.f32 0.16666667, %v1078_v15  ;;  %v321_v52 = vld [vmem:[%s1873_s19 + $0x390] sm:$0xff] }
  0xf4   : > { %1333 = vst [vmem:[%s1913_s20 + $0x330] sm:$0xff] %v1205_v14  ;;  %v823_v25 = vmax.f32 %v695_v16, 0.0  ;;  %v698_v26 = vadd.f32 3.0, %v570_v17  ;;  %v573_v27 = vadd.f32 %v445_v13, %v317_v12  ;;  %v824_v28 = vmax.f32 %v696_v18, 0.0  ;;  %v449_v57 = vld [vmem:[%s1881_s29 + $0x390] sm:$0xff]  ;;  %v322_v58 = vld [vmem:[%s1873_s19 + $0x398] sm:$0xff] }
  0xf5   : > { %v825_v29 = vmax.f32 %v697_v19, 0.0  ;;  %v699_v30 = vadd.f32 3.0, %v571_v20  ;;  %v700_v31 = vadd.f32 3.0, %v572_v21  ;;  %1334 = vst [vmem:[%s1913_s20 + $0x338] sm:$0xff] %v1206_v24  ;;  %v574_v35 = vadd.f32 %v446_v23, %v318_v22  ;;  %v450_v63 = vld [vmem:[%s1881_s29 + $0x398] sm:$0xff]  ;;  %v323_v0 = vld [vmem:[%s1873_s19 + $0x3a0] sm:$0xff] }
  0xf6   : > { %v951_v32 = vmin.f32 %v823_v25, 6.0  ;;  %v826_v33 = vmax.f32 %v698_v26, 0.0  ;;  %v701_v34 = vadd.f32 3.0, %v573_v27  ;;  %v952_v36 = vmin.f32 %v824_v28, 6.0  ;;  %v451_v5 = vld [vmem:[%s1881_s29 + $0x3a0] sm:$0xff]  ;;  %v324_v6 = vld [vmem:[%s1873_s19 + $0x3a8] sm:$0xff] }
  0xf7   : > { %v953_v37 = vmin.f32 %v825_v29, 6.0  ;;  %v827_v38 = vmax.f32 %v699_v30, 0.0  ;;  %v828_v39 = vmax.f32 %v700_v31, 0.0  ;;  %v702_v43 = vadd.f32 3.0, %v574_v35  ;;  %v452_v7 = vld [vmem:[%s1881_s29 + $0x3a8] sm:$0xff]  ;;  %v325_v12 = vld [vmem:[%s1873_s19 + $0x3b0] sm:$0xff] }
  0xf8   : > { %v1079_v40 = vmul.f32 %v951_v32, %v567_v4  ;;  %v954_v41 = vmin.f32 %v826_v33, 6.0  ;;  %v829_v42 = vmax.f32 %v701_v34, 0.0  ;;  %v1080_v46 = vmul.f32 %v952_v36, %v568_v10  ;;  %v453_v13 = vld [vmem:[%s1881_s29 + $0x3b0] sm:$0xff]  ;;  %v326_v22 = vld [vmem:[%s1873_s19 + $0x3b8] sm:$0xff] }
  0xf9   : > { %v1081_v47 = vmul.f32 %v953_v37, %v569_v11  ;;  %v955_v48 = vmin.f32 %v827_v38, 6.0  ;;  %v956_v49 = vmin.f32 %v828_v39, 6.0  ;;  %v830_v56 = vmax.f32 %v702_v43, 0.0  ;;  %v454_v23 = vld [vmem:[%s1881_s29 + $0x3b8] sm:$0xff] }
  0xfa   : > { %v1207_v53 = vmul.f32 0.16666667, %v1079_v40  ;;  %v1082_v54 = vmul.f32 %v954_v41, %v570_v17  ;;  %v957_v55 = vmin.f32 %v829_v42, 6.0  ;;  %v1208_v59 = vmul.f32 0.16666667, %v1080_v46 }
  0xfb   : > { %v1209_v60 = vmul.f32 0.16666667, %v1081_v47  ;;  %v1083_v61 = vmul.f32 %v955_v48, %v571_v20  ;;  %v1084_v62 = vmul.f32 %v956_v49, %v572_v21  ;;  %v958_v3 = vmin.f32 %v830_v56, 6.0 }
  0xfc   : > { %1335 = vst [vmem:[%s1913_s20 + $0x340] sm:$0xff] %v1207_v53  ;;  %v1210_v1 = vmul.f32 0.16666667, %v1082_v54  ;;  %v1085_v2 = vmul.f32 %v957_v55, %v573_v27  ;;  %v575_v4 = vadd.f32 %v447_v45, %v319_v44  ;;  %1336 = vst [vmem:[%s1913_s20 + $0x348] sm:$0xff] %v1208_v59  ;;  %v576_v10 = vadd.f32 %v448_v51, %v320_v50  ;;  %v327_v44 = vld [vmem:[%s1873_s19 + $0x3c0] sm:$0xff]  ;;  %v328_v50 = vld [vmem:[%s1873_s19 + $0x3c8] sm:$0xff] }
  0xfd   : > { %1337 = vst [vmem:[%s1913_s20 + $0x350] sm:$0xff] %v1209_v60  ;;  %v1211_v8 = vmul.f32 0.16666667, %v1083_v61  ;;  %v1212_v9 = vmul.f32 0.16666667, %v1084_v62  ;;  %v577_v11 = vadd.f32 %v449_v57, %v321_v52  ;;  %v1086_v15 = vmul.f32 %v958_v3, %v574_v35  ;;  %v455_v45 = vld [vmem:[%s1881_s29 + $0x3c0] sm:$0xff] }
  0xfe   : > { %1338 = vst [vmem:[%s1913_s20 + $0x358] sm:$0xff] %v1210_v1  ;;  %v1213_v14 = vmul.f32 0.16666667, %v1085_v2  ;;  %v703_v16 = vadd.f32 3.0, %v575_v4  ;;  %v578_v17 = vadd.f32 %v450_v63, %v322_v58  ;;  %v704_v18 = vadd.f32 3.0, %v576_v10  ;;  %v456_v51 = vld [vmem:[%s1881_s29 + $0x3c8] sm:$0xff] }
  0xff   : > { %1339 = vst [vmem:[%s1913_s20 + $0x360] sm:$0xff] %v1211_v8  ;;  %1340 = vst [vmem:[%s1913_s20 + $0x368] sm:$0xff] %v1212_v9  ;;  %v705_v19 = vadd.f32 3.0, %v577_v11  ;;  %v579_v20 = vadd.f32 %v451_v5, %v323_v0  ;;  %v580_v21 = vadd.f32 %v452_v7, %v324_v6  ;;  %v1214_v24 = vmul.f32 0.16666667, %v1086_v15  ;;  %v329_v52 = vld [vmem:[%s1873_s19 + $0x3d0] sm:$0xff] }
 0x100   : > { %1341 = vst [vmem:[%s1913_s20 + $0x370] sm:$0xff] %v1213_v14  ;;  %v831_v25 = vmax.f32 %v703_v16, 0.0  ;;  %v706_v26 = vadd.f32 3.0, %v578_v17  ;;  %v581_v27 = vadd.f32 %v453_v13, %v325_v12  ;;  %v832_v28 = vmax.f32 %v704_v18, 0.0  ;;  %v457_v57 = vld [vmem:[%s1881_s29 + $0x3d0] sm:$0xff]  ;;  %v330_v58 = vld [vmem:[%s1873_s19 + $0x3d8] sm:$0xff] }
 0x101   : > { %v833_v29 = vmax.f32 %v705_v19, 0.0  ;;  %v707_v30 = vadd.f32 3.0, %v579_v20  ;;  %v708_v31 = vadd.f32 3.0, %v580_v21  ;;  %1342 = vst [vmem:[%s1913_s20 + $0x378] sm:$0xff] %v1214_v24  ;;  %v582_v35 = vadd.f32 %v454_v23, %v326_v22  ;;  %v458_v63 = vld [vmem:[%s1881_s29 + $0x3d8] sm:$0xff]  ;;  %v331_v0 = vld [vmem:[%s1873_s19 + $0x3e0] sm:$0xff] }
 0x102   : > { %v959_v32 = vmin.f32 %v831_v25, 6.0  ;;  %v834_v33 = vmax.f32 %v706_v26, 0.0  ;;  %v709_v34 = vadd.f32 3.0, %v581_v27  ;;  %v960_v36 = vmin.f32 %v832_v28, 6.0  ;;  %v459_v5 = vld [vmem:[%s1881_s29 + $0x3e0] sm:$0xff]  ;;  %v332_v6 = vld [vmem:[%s1873_s19 + $0x3e8] sm:$0xff] }
 0x103   : > { %v961_v37 = vmin.f32 %v833_v29, 6.0  ;;  %v835_v38 = vmax.f32 %v707_v30, 0.0  ;;  %v836_v39 = vmax.f32 %v708_v31, 0.0  ;;  %v710_v43 = vadd.f32 3.0, %v582_v35  ;;  %v460_v7 = vld [vmem:[%s1881_s29 + $0x3e8] sm:$0xff]  ;;  %v333_v12 = vld [vmem:[%s1873_s19 + $0x3f0] sm:$0xff] }
 0x104   : > { %v1087_v40 = vmul.f32 %v959_v32, %v575_v4  ;;  %v962_v41 = vmin.f32 %v834_v33, 6.0  ;;  %v837_v42 = vmax.f32 %v709_v34, 0.0  ;;  %v1088_v46 = vmul.f32 %v960_v36, %v576_v10  ;;  %v461_v13 = vld [vmem:[%s1881_s29 + $0x3f0] sm:$0xff]  ;;  %v334_v22 = vld [vmem:[%s1873_s19 + $0x3f8] sm:$0xff] }
 0x105   : > { %v1089_v47 = vmul.f32 %v961_v37, %v577_v11  ;;  %v963_v48 = vmin.f32 %v835_v38, 6.0  ;;  %v964_v49 = vmin.f32 %v836_v39, 6.0  ;;  %v838_v56 = vmax.f32 %v710_v43, 0.0  ;;  %v462_v23 = vld [vmem:[%s1881_s29 + $0x3f8] sm:$0xff] }
 0x106   : > { %v1215_v53 = vmul.f32 0.16666667, %v1087_v40  ;;  %v1090_v54 = vmul.f32 %v962_v41, %v578_v17  ;;  %v965_v55 = vmin.f32 %v837_v42, 6.0  ;;  %v1216_v59 = vmul.f32 0.16666667, %v1088_v46 }
 0x107   : > { %v1217_v60 = vmul.f32 0.16666667, %v1089_v47  ;;  %v1091_v61 = vmul.f32 %v963_v48, %v579_v20  ;;  %v1092_v62 = vmul.f32 %v964_v49, %v580_v21  ;;  %v966_v3 = vmin.f32 %v838_v56, 6.0 }
 0x108   : > { %1343 = vst [vmem:[%s1913_s20 + $0x380] sm:$0xff] %v1215_v53  ;;  %v1218_v1 = vmul.f32 0.16666667, %v1090_v54  ;;  %v1093_v2 = vmul.f32 %v965_v55, %v581_v27  ;;  %v583_v4 = vadd.f32 %v455_v45, %v327_v44  ;;  %1344 = vst [vmem:[%s1913_s20 + $0x388] sm:$0xff] %v1216_v59  ;;  %v584_v10 = vadd.f32 %v456_v51, %v328_v50 }
 0x109   : > { %1345 = vst [vmem:[%s1913_s20 + $0x390] sm:$0xff] %v1217_v60  ;;  %v1219_v8 = vmul.f32 0.16666667, %v1091_v61  ;;  %v1220_v9 = vmul.f32 0.16666667, %v1092_v62  ;;  %v585_v11 = vadd.f32 %v457_v57, %v329_v52  ;;  %v1094_v15 = vmul.f32 %v966_v3, %v582_v35 }
 0x10a   : > { %1346 = vst [vmem:[%s1913_s20 + $0x398] sm:$0xff] %v1218_v1  ;;  %v1221_v14 = vmul.f32 0.16666667, %v1093_v2  ;;  %v711_v16 = vadd.f32 3.0, %v583_v4  ;;  %v586_v17 = vadd.f32 %v458_v63, %v330_v58  ;;  %v712_v18 = vadd.f32 3.0, %v584_v10 }
 0x10b   : > { %1347 = vst [vmem:[%s1913_s20 + $0x3a0] sm:$0xff] %v1219_v8  ;;  %1348 = vst [vmem:[%s1913_s20 + $0x3a8] sm:$0xff] %v1220_v9  ;;  %v713_v19 = vadd.f32 3.0, %v585_v11  ;;  %v587_v20 = vadd.f32 %v459_v5, %v331_v0  ;;  %v588_v21 = vadd.f32 %v460_v7, %v332_v6  ;;  %v1222_v24 = vmul.f32 0.16666667, %v1094_v15 }
 0x10c   : > { %1349 = vst [vmem:[%s1913_s20 + $0x3b0] sm:$0xff] %v1221_v14  ;;  %v839_v25 = vmax.f32 %v711_v16, 0.0  ;;  %v714_v26 = vadd.f32 3.0, %v586_v17  ;;  %v589_v27 = vadd.f32 %v461_v13, %v333_v12  ;;  %v840_v28 = vmax.f32 %v712_v18, 0.0 }
 0x10d   : > { %v841_v29 = vmax.f32 %v713_v19, 0.0  ;;  %v715_v30 = vadd.f32 3.0, %v587_v20  ;;  %v716_v31 = vadd.f32 3.0, %v588_v21  ;;  %1350 = vst [vmem:[%s1913_s20 + $0x3b8] sm:$0xff] %v1222_v24  ;;  %v590_v35 = vadd.f32 %v462_v23, %v334_v22 }
 0x10e   : > { %v967_v32 = vmin.f32 %v839_v25, 6.0  ;;  %v842_v33 = vmax.f32 %v714_v26, 0.0  ;;  %v717_v34 = vadd.f32 3.0, %v589_v27  ;;  %v968_v36 = vmin.f32 %v840_v28, 6.0 }
 0x10f   : > { %v969_v37 = vmin.f32 %v841_v29, 6.0  ;;  %v843_v38 = vmax.f32 %v715_v30, 0.0  ;;  %v844_v39 = vmax.f32 %v716_v31, 0.0  ;;  %v718_v43 = vadd.f32 3.0, %v590_v35 }
 0x110   : > { %v1095_v40 = vmul.f32 %v967_v32, %v583_v4  ;;  %v970_v41 = vmin.f32 %v842_v33, 6.0  ;;  %v845_v42 = vmax.f32 %v717_v34, 0.0  ;;  %v1096_v44 = vmul.f32 %v968_v36, %v584_v10 }
 0x111   : > { %v1097_v45 = vmul.f32 %v969_v37, %v585_v11  ;;  %v971_v46 = vmin.f32 %v843_v38, 6.0  ;;  %v972_v47 = vmin.f32 %v844_v39, 6.0  ;;  %v846_v51 = vmax.f32 %v718_v43, 0.0 }
 0x112   : > { %v1223_v48 = vmul.f32 0.16666667, %v1095_v40  ;;  %v1098_v49 = vmul.f32 %v970_v41, %v586_v17  ;;  %v973_v50 = vmin.f32 %v845_v42, 6.0  ;;  %v1224_v52 = vmul.f32 0.16666667, %v1096_v44 }
 0x113   : > { %v1225_v53 = vmul.f32 0.16666667, %v1097_v45  ;;  %v1099_v54 = vmul.f32 %v971_v46, %v587_v20  ;;  %v1100_v55 = vmul.f32 %v972_v47, %v588_v21  ;;  %v974_v58 = vmin.f32 %v846_v51, 6.0 }
 0x114   : > { %1351 = vst [vmem:[%s1913_s20 + $0x3c0] sm:$0xff] %v1223_v48  ;;  %v1226_v56 = vmul.f32 0.16666667, %v1098_v49  ;;  %v1101_v57 = vmul.f32 %v973_v50, %v589_v27  ;;  %1352 = vst [vmem:[%s1913_s20 + $0x3c8] sm:$0xff] %v1224_v52 }
 0x115   : > { %1353 = vst [vmem:[%s1913_s20 + $0x3d0] sm:$0xff] %v1225_v53  ;;  %v1227_v59 = vmul.f32 0.16666667, %v1099_v54  ;;  %v1228_v60 = vmul.f32 0.16666667, %v1100_v55  ;;  %v1102_v62 = vmul.f32 %v974_v58, %v590_v35 }
 0x116   : > { %1354 = vst [vmem:[%s1913_s20 + $0x3d8] sm:$0xff] %v1226_v56  ;;  %v1229_v61 = vmul.f32 0.16666667, %v1101_v57 }
 0x117   : > { %1355 = vst [vmem:[%s1913_s20 + $0x3e0] sm:$0xff] %v1227_v59  ;;  %1356 = vst [vmem:[%s1913_s20 + $0x3e8] sm:$0xff] %v1228_v60  ;;  %v1230_v63 = vmul.f32 0.16666667, %v1102_v62 }
 0x118   : > { %1357 = vst [vmem:[%s1913_s20 + $0x3f0] sm:$0xff] %v1229_v61 }
 0x119   : > { %1358 = vst [vmem:[%s1913_s20 + $0x3f8] sm:$0xff] %v1230_v63 }
 0x11a   : > { %1625 = shalt.err (!%p1622_p11)
}
 0x11b   : > { %s1626_s7 = scalar_lea.hbm %s2275_s13, 16384  ;;  %s1630_s4 = scalar_lea.hbm %s2327_s2, 32768 }
 0x11c   : > { %p1627_p3 = scmp.ne.s32.totalorder %s2275_s13, %s1626_s7  ;;  %p1631_p2 = scmp.lt.u32.totalorder %s2275_s13, %s2327_s2 }
 0x11d   : > { %p1632_p4 = scmp.lt.u32.totalorder %s1630_s4, %s1626_s7  ;;  %p1634_p13 = scmp.lt.u32.totalorder %s1626_s7, %s2275_s13 }
 0x11e   : > { %p1628_p8 = pnand %p1627_p3, %p2337_p1 }
 0x11f   : > { %p1633_p6 = por %p1632_p4, %p1631_p2 }
 0x120   : > { %p1629_p0 = pneg %p1628_p8 }
 0x121   : > { %p1635_p12 = por %p1634_p13, %p1633_p6 }
 0x123   : > { %p1636_p10 = pnand %p1635_p12, %p1629_p0 }
 0x125   : > { %1639 = shalt.err (!%p1636_p10)
}
 0x126   : > { %s1689_s23 = smov 8192   ;;  %s1690_s29 = smov 512  }
 0x127   : > { %1501 = dma.vmem_to_hbm [thread:$0]  (%p2337_p1), %s2279_s6, 16384, %s2275_s13, %s1360_s28, %s1689_s23, %s1689_s23, %s1690_s29  }
 0x128 PF: > { %s1389_s20 = sand.u32 1, %s1670_s9   ;;  %p2338_p5 = scmp.ne.s32.totalorder %s2333_s22, 0 }
 0x129   : > { %p2339_p7 = scmp.ge.s32.totalorder %s1682_s12, 2  ;;  %s1390_s5 = scalar_lea.sflag [#allocation4], %s1389_s20 }
 0x12b   : > { %p1511_p9 = pnand %p2339_p7, %p2338_p5 }
 0x12d   : > { %1665 = dma.done.wait (!%p1511_p9), %s1390_s5, 16384  }
 0x12e   : > { %1667 = vsyncadd (!%p1511_p9), %s1390_s5, 4294950912  ;;  %p18_p11 = scmp.ge.s32.totalorder %s1731_s15, 4   ;;  %s2340_s9 = smov %s1674_s10 }
 0x12f   : > { %s2341_s10 = smov %s1678_s11  ;;  %s2342_s11 = smov %s1743_s18 }
 0x130   : > { %s2343_s12 = smov %s1731_s15  ;;  %20 = sbr.rel (!%p18_p11) target bundleno = 7 (0x7), region = 86 }
 0x137   :  { %1395 = vsyncpa [#allocation3], 1 }
 0x138   :  { %1397 = vsyncpa [#allocation3 + $0x1], 1 }
 0x139   :  { %1398 = vsyncpa [#allocation6], 1 }
 0x13a   :  { %1400 = vsyncpa [#allocation6 + $0x1], 1 }
 0x13b   :  { %1401 = vsyncpa [#allocation4], 1 }
 0x13c   :  { %1403 = vsyncpa [#allocation4 + $0x1], 1 }

</bundles_post_ra>
